<compile_context>
chip_gen: v6e
topology: v6e:2x2x1
jax: 0.10.0
libtpu: 0.0.40
codegen_flags: <defaults>
</compile_context>

<pallas_src>
import functools

import jax
import jax.numpy as jnp
from jax.experimental import pallas as pl
from jax.experimental.pallas import tpu as pltpu

BN_EPS = 1e-5
NORM_EPS = 1e-12  # F.normalize clamp_min eps


def _latent_pred_head_kernel(x_ref, t_ref, w1_ref, g_ref, beta_ref, w2_ref,
                             b2_ref, loss_ref, sum_ref, sumsq_ref,
                             *, n_total, mm_dtype):
    phase = pl.program_id(0)        # 0: accumulate BN batch stats, 1: apply + loss
    i = pl.program_id(1)            # N-tile index
    nt = pl.num_programs(1)

    def mm(a, b):
        if mm_dtype is not None:
            a = a.astype(mm_dtype)
            b = b.astype(mm_dtype)
        return jnp.dot(a, b, preferred_element_type=jnp.float32)

    @pl.when(jnp.logical_and(phase == 0, i == 0))
    def _init():
        sum_ref[...] = jnp.zeros_like(sum_ref)
        sumsq_ref[...] = jnp.zeros_like(sumsq_ref)
        loss_ref[0, 0] = 0.0

    @pl.when(phase == 0)
    def _stats():
        # fc1 (b1 omitted — exactly cancelled by the batch-mean subtraction in BN)
        h = mm(x_ref[...], w1_ref[...])                               # (TN, H)
        sum_ref[...] += jnp.sum(h, axis=0, keepdims=True)             # (1, H)
        sumsq_ref[...] += jnp.sum(h * h, axis=0, keepdims=True)       # (1, H)

    @pl.when(phase == 1)
    def _apply():
        inv_n = 1.0 / n_total
        mean = sum_ref[...] * inv_n                                   # (1, H)
        var = sumsq_ref[...] * inv_n - mean * mean                    # biased var
        scale = g_ref[...] * jax.lax.rsqrt(var + BN_EPS)              # (1, H)
        shift = beta_ref[...] - mean * scale                          # (1, H)

        h = mm(x_ref[...], w1_ref[...])                               # (TN, H)
        h = jnp.maximum(h * scale + shift, 0.0)                       # folded BN + ReLU
        pred = mm(h, w2_ref[...]) + b2_ref[...]                       # (TN, C)

        tgt = t_ref[...]                                              # (TN, C)
        # L2 normalize via rsqrt of squared norms; fold into the inner product so
        # pred_norm / tgt_norm are never materialized.
        inv_p = jax.lax.rsqrt(
            jnp.maximum(jnp.sum(pred * pred, axis=1, keepdims=True), NORM_EPS * NORM_EPS))
        inv_t = jax.lax.rsqrt(
            jnp.maximum(jnp.sum(tgt * tgt, axis=1, keepdims=True), NORM_EPS * NORM_EPS))
        pt = jnp.sum(pred * tgt, axis=1, keepdims=True)               # (TN, 1)

        loss_ref[0, 0] += (-2.0 * inv_n) * jnp.sum(pt * inv_p * inv_t)


def latent_pred_head(inputs, targets, w1, b1, gamma, beta, w2, b2,
                     *, tile_n=128, mm_dtype=None):
    """Forward of LatentPredictHead. Returns {'loss': scalar}.

    b1 is accepted for interface parity with the PyTorch predictor but is not
    passed to the kernel: BatchNorm's batch-mean subtraction cancels it exactly.
    mm_dtype=jnp.bfloat16 gives 2x MXU throughput on v6e/v7x (f32 accumulation
    is kept); default None keeps full f32 matmuls.
    """
    del b1  # mathematically cancelled by BN batch-mean subtraction
    N, C = inputs.shape
    H = w1.shape[1]

    if N % tile_n != 0:
        tile_n = N  # single N-tile fallback (block == full dim, always legal)
    nt = N // tile_n

    gamma = gamma.reshape(1, H).astype(jnp.float32)
    beta = beta.reshape(1, H).astype(jnp.float32)
    b2 = b2.reshape(1, C).astype(jnp.float32)

    kernel = functools.partial(_latent_pred_head_kernel,
                               n_total=float(N), mm_dtype=mm_dtype)

    # Per-step VMEM footprint (f32, double-buffered x/targets tiles + resident
    # weights + (1,H) stats) is tiny for these shapes; well under the 32 MiB
    # default scoped limit on every generation (v5e/v6e/v7x).
    loss = pl.pallas_call(
        kernel,
        out_shape=jax.ShapeDtypeStruct((1, 1), jnp.float32),
        grid_spec=pltpu.PrefetchScalarGridSpec(
            num_scalar_prefetch=0,
            grid=(2, nt),  # (phase, N-tiles); last axis changes fastest
            in_specs=[
                pl.BlockSpec((tile_n, C), lambda p, i: (i, 0)),      # x
                # targets are only consumed in phase 1; keep block index constant
                # during phase 0 so they are not re-fetched there.
                pl.BlockSpec((tile_n, C), lambda p, i: (i * p, 0)),  # targets
                pl.BlockSpec((C, H), lambda p, i: (0, 0)),           # w1 (resident)
                pl.BlockSpec((1, H), lambda p, i: (0, 0)),           # gamma
                pl.BlockSpec((1, H), lambda p, i: (0, 0)),           # beta
                pl.BlockSpec((H, C), lambda p, i: (0, 0)),           # w2 (resident)
                pl.BlockSpec((1, C), lambda p, i: (0, 0)),           # b2
            ],
            out_specs=pl.BlockSpec(memory_space=pltpu.SMEM),         # scalar loss
            scratch_shapes=[
                pltpu.VMEM((1, H), jnp.float32),   # sum(h)   over the batch
                pltpu.VMEM((1, H), jnp.float32),   # sum(h*h) over the batch
            ],
        ),
        # Both axes sequential: phase 1 needs the complete batch statistics, so
        # the N axis cannot be megacore-split without per-core stat merging.
        # TODO(synk): per-core partial BN stats + merge to use both v7x cores.
        compiler_params=pltpu.CompilerParams(
            dimension_semantics=("arbitrary", "arbitrary")),
    )(inputs, targets, w1, gamma, beta, w2, b2)
    return {"loss": loss[0, 0]}


def reference(inputs, targets, w1, b1, gamma, beta, w2, b2):
    """Pure-JAX reference matching the PyTorch module (training-mode BN)."""
    h = inputs @ w1 + b1
    mean = h.mean(axis=0, keepdims=True)
    var = ((h - mean) ** 2).mean(axis=0, keepdims=True)
    h = (h - mean) / jnp.sqrt(var + BN_EPS) * gamma + beta
    h = jnp.maximum(h, 0.0)
    pred = h @ w2 + b2
    pn = pred / jnp.maximum(jnp.linalg.norm(pred, axis=1, keepdims=True), NORM_EPS)
    tn = targets / jnp.maximum(jnp.linalg.norm(targets, axis=1, keepdims=True), NORM_EPS)
    return -2.0 * jnp.sum(pn * tn) / inputs.shape[0]


if __name__ == "__main__":
    # Lane-aligned sizes: C, H multiples of 128 (lane dim), N multiple of 128 rows.
    N, C, H = 256, 128, 256

    key = jax.random.PRNGKey(0)
    k_x, k_t, k_w1, k_w2 = jax.random.split(key, 4)

    inputs = jax.random.normal(k_x, (N, C), dtype=jnp.float32)
    targets = jax.random.normal(k_t, (N, C), dtype=jnp.float32)

    # init_weights('normal'): normal(0, 0.01) weights, zero biases, BN affine = (1, 0)
    w1 = jax.random.normal(k_w1, (C, H), dtype=jnp.float32) * 0.01
    b1 = jnp.zeros((H,), dtype=jnp.float32)
    gamma = jnp.ones((H,), dtype=jnp.float32)
    beta = jnp.zeros((H,), dtype=jnp.float32)
    w2 = jax.random.normal(k_w2, (H, C), dtype=jnp.float32) * 0.01
    b2 = jnp.zeros((C,), dtype=jnp.float32)

    out = latent_pred_head(inputs, targets, w1, b1, gamma, beta, w2, b2)
    loss = jax.block_until_ready(out["loss"])

    ref = reference(inputs, targets, w1, b1, gamma, beta, w2, b2)
    assert jnp.allclose(loss, ref, atol=1e-5, rtol=1e-4), (loss, ref)

    print("KERNEL_OK")
</pallas_src>

<mosaic_0001>
module attributes {stable_mosaic.version = 11 : i64} {
  func.func @_latent_pred_head_kernel(%arg0: i32, %arg1: i32, %arg2: memref<128x128xf32, #tpu.memory_space<vmem>>, %arg3: memref<128x128xf32, #tpu.memory_space<vmem>>, %arg4: memref<128x256xf32, #tpu.memory_space<vmem>>, %arg5: memref<1x256xf32, #tpu.memory_space<vmem>>, %arg6: memref<1x256xf32, #tpu.memory_space<vmem>>, %arg7: memref<256x128xf32, #tpu.memory_space<vmem>>, %arg8: memref<1x128xf32, #tpu.memory_space<vmem>>, %arg9: memref<1x1xf32, #tpu.memory_space<smem>>, %arg10: memref<1x256xf32, #tpu.memory_space<vmem>>, %arg11: memref<1x256xf32, #tpu.memory_space<vmem>>) attributes {dimension_semantics = [#tpu.dimension_semantics<arbitrary>, #tpu.dimension_semantics<arbitrary>], iteration_bounds = array<i64: 2, 2>, scalar_prefetch = 0 : i64, scratch_operands = 2 : i64, tpu.core_type = #tpu.core_type<tc>, window_params = [{transform_indices = @transform_0, window_bounds = array<i64: 128, 128>}, {transform_indices = @transform_1, window_bounds = array<i64: 128, 128>}, {pipeline_mode = #tpu.pipeline_mode<synchronous>, transform_indices = @transform_2, window_bounds = array<i64: 128, 256>}, {pipeline_mode = #tpu.pipeline_mode<synchronous>, transform_indices = @transform_3, window_bounds = array<i64: 1, 256>}, {pipeline_mode = #tpu.pipeline_mode<synchronous>, transform_indices = @transform_4, window_bounds = array<i64: 1, 256>}, {pipeline_mode = #tpu.pipeline_mode<synchronous>, transform_indices = @transform_5, window_bounds = array<i64: 256, 128>}, {pipeline_mode = #tpu.pipeline_mode<synchronous>, transform_indices = @transform_6, window_bounds = array<i64: 1, 128>}, {transform_indices = @transform_7, window_bounds = array<i64: 1, 1>}]} {
    %c0_i32 = arith.constant 0 : i32
    %0 = arith.cmpi eq, %arg0, %c0_i32 : i32
    %c0_i32_0 = arith.constant 0 : i32
    %1 = arith.cmpi eq, %arg1, %c0_i32_0 : i32
    %2 = arith.andi %0, %1 : i1
    %3 = arith.extui %2 : i1 to i32
    %c0_i32_1 = arith.constant 0 : i32
    %4 = arith.cmpi ne, %3, %c0_i32_1 : i32
    scf.if %4 {
      %cst = arith.constant 0.000000e+00 : f32
      %11 = vector.broadcast %cst : f32 to vector<1x256xf32>
      %c0 = arith.constant 0 : index
      %c0_5 = arith.constant 0 : index
      %12 = vector.load %arg10[%c0, %c0_5] : memref<1x256xf32, #tpu.memory_space<vmem>>, vector<1x256xf32>
      tpu.vector_store %arg10[%c0, %c0_5], %11 {strides = array<i32>} : memref<1x256xf32, #tpu.memory_space<vmem>>, vector<1x256xf32>,
      %cst_6 = arith.constant 0.000000e+00 : f32
      %13 = vector.broadcast %cst_6 : f32 to vector<1x256xf32>
      %c0_7 = arith.constant 0 : index
      %c0_8 = arith.constant 0 : index
      %14 = vector.load %arg11[%c0_7, %c0_8] : memref<1x256xf32, #tpu.memory_space<vmem>>, vector<1x256xf32>
      tpu.vector_store %arg11[%c0_7, %c0_8], %13 {strides = array<i32>} : memref<1x256xf32, #tpu.memory_space<vmem>>, vector<1x256xf32>,
      %cst_9 = arith.constant 0.000000e+00 : f32
      %c0_10 = arith.constant 0 : index
      %c0_11 = arith.constant 0 : index
      %15 = memref.load %arg9[%c0_10, %c0_11] : memref<1x1xf32, #tpu.memory_space<smem>>
      memref.store %cst_9, %arg9[%c0_10, %c0_11] : memref<1x1xf32, #tpu.memory_space<smem>>
    } else {
    }
    %c0_i32_2 = arith.constant 0 : i32
    %5 = arith.cmpi eq, %arg0, %c0_i32_2 : i32
    %6 = arith.extui %5 : i1 to i32
    %c0_i32_3 = arith.constant 0 : i32
    %7 = arith.cmpi ne, %6, %c0_i32_3 : i32
    scf.if %7 {
      %c0 = arith.constant 0 : index
      %c0_5 = arith.constant 0 : index
      %11 = vector.load %arg2[%c0, %c0_5] : memref<128x128xf32, #tpu.memory_space<vmem>>, vector<128x128xf32>
      %c0_6 = arith.constant 0 : index
      %c0_7 = arith.constant 0 : index
      %12 = vector.load %arg4[%c0_6, %c0_7] : memref<128x256xf32, #tpu.memory_space<vmem>>, vector<128x256xf32>
      %cst = arith.constant dense<0.000000e+00> : vector<128x256xf32>
      %13 = tpu.matmul %11, %12, %cst {dimension_numbers = #tpu.dot_dimension_numbers<[1], [0], [0], [1], [0, 0, 1, 1], [], []>} : vector<128x128xf32>, vector<128x256xf32>, vector<128x256xf32> -> vector<128x256xf32>
      %c0_8 = arith.constant 0 : index
      %c0_9 = arith.constant 0 : index
      %14 = vector.load %arg10[%c0_8, %c0_9] : memref<1x256xf32, #tpu.memory_space<vmem>>, vector<1x256xf32>
      %cst_10 = arith.constant dense<0.000000e+00> : vector<256xf32>
      %15 = vector.multi_reduction <add>, %13, %cst_10 [0] : vector<128x256xf32> to vector<256xf32>
      %16 = vector.shape_cast %15 : vector<256xf32> to vector<1x256xf32>
      %17 = arith.addf %14, %16 : vector<1x256xf32>
      %c0_11 = arith.constant 0 : index
      %c0_12 = arith.constant 0 : index
      %18 = vector.load %arg10[%c0_11, %c0_12] : memref<1x256xf32, #tpu.memory_space<vmem>>, vector<1x256xf32>
      tpu.vector_store %arg10[%c0_11, %c0_12], %17 {strides = array<i32>} : memref<1x256xf32, #tpu.memory_space<vmem>>, vector<1x256xf32>,
      %c0_13 = arith.constant 0 : index
      %c0_14 = arith.constant 0 : index
      %19 = vector.load %arg11[%c0_13, %c0_14] : memref<1x256xf32, #tpu.memory_space<vmem>>, vector<1x256xf32>
      %20 = arith.mulf %13, %13 : vector<128x256xf32>
      %cst_15 = arith.constant dense<0.000000e+00> : vector<256xf32>
      %21 = vector.multi_reduction <add>, %20, %cst_15 [0] : vector<128x256xf32> to vector<256xf32>
      %22 = vector.shape_cast %21 : vector<256xf32> to vector<1x256xf32>
      %23 = arith.addf %19, %22 : vector<1x256xf32>
      %c0_16 = arith.constant 0 : index
      %c0_17 = arith.constant 0 : index
      %24 = vector.load %arg11[%c0_16, %c0_17] : memref<1x256xf32, #tpu.memory_space<vmem>>, vector<1x256xf32>
      tpu.vector_store %arg11[%c0_16, %c0_17], %23 {strides = array<i32>} : memref<1x256xf32, #tpu.memory_space<vmem>>, vector<1x256xf32>,
    } else {
    }
    %c1_i32 = arith.constant 1 : i32
    %8 = arith.cmpi eq, %arg0, %c1_i32 : i32
    %9 = arith.extui %8 : i1 to i32
    %c0_i32_4 = arith.constant 0 : i32
    %10 = arith.cmpi ne, %9, %c0_i32_4 : i32
    scf.if %10 {
      %c0 = arith.constant 0 : index
      %c0_5 = arith.constant 0 : index
      %11 = vector.load %arg10[%c0, %c0_5] : memref<1x256xf32, #tpu.memory_space<vmem>>, vector<1x256xf32>
      %cst = arith.constant 3.906250e-03 : f32
      %12 = vector.broadcast %cst : f32 to vector<1x256xf32>
      %13 = arith.mulf %11, %12 : vector<1x256xf32>
      %c0_6 = arith.constant 0 : index
      %c0_7 = arith.constant 0 : index
      %14 = vector.load %arg11[%c0_6, %c0_7] : memref<1x256xf32, #tpu.memory_space<vmem>>, vector<1x256xf32>
      %cst_8 = arith.constant 3.906250e-03 : f32
      %15 = vector.broadcast %cst_8 : f32 to vector<1x256xf32>
      %16 = arith.mulf %14, %15 : vector<1x256xf32>
      %17 = arith.mulf %13, %13 : vector<1x256xf32>
      %18 = arith.subf %16, %17 : vector<1x256xf32>
      %c0_9 = arith.constant 0 : index
      %c0_10 = arith.constant 0 : index
      %19 = vector.load %arg5[%c0_9, %c0_10] : memref<1x256xf32, #tpu.memory_space<vmem>>, vector<1x256xf32>
      %cst_11 = arith.constant 9.99999974E-6 : f32
      %20 = vector.broadcast %cst_11 : f32 to vector<1x256xf32>
      %21 = arith.addf %18, %20 : vector<1x256xf32>
      %22 = math.rsqrt %21 : vector<1x256xf32>
      %23 = arith.mulf %19, %22 : vector<1x256xf32>
      %c0_12 = arith.constant 0 : index
      %c0_13 = arith.constant 0 : index
      %24 = vector.load %arg6[%c0_12, %c0_13] : memref<1x256xf32, #tpu.memory_space<vmem>>, vector<1x256xf32>
      %25 = arith.mulf %13, %23 : vector<1x256xf32>
      %26 = arith.subf %24, %25 : vector<1x256xf32>
      %c0_14 = arith.constant 0 : index
      %c0_15 = arith.constant 0 : index
      %27 = vector.load %arg2[%c0_14, %c0_15] : memref<128x128xf32, #tpu.memory_space<vmem>>, vector<128x128xf32>
      %c0_16 = arith.constant 0 : index
      %c0_17 = arith.constant 0 : index
      %28 = vector.load %arg4[%c0_16, %c0_17] : memref<128x256xf32, #tpu.memory_space<vmem>>, vector<128x256xf32>
      %cst_18 = arith.constant dense<0.000000e+00> : vector<128x256xf32>
      %29 = tpu.matmul %27, %28, %cst_18 {dimension_numbers = #tpu.dot_dimension_numbers<[1], [0], [0], [1], [0, 0, 1, 1], [], []>} : vector<128x128xf32>, vector<128x256xf32>, vector<128x256xf32> -> vector<128x256xf32>
      %30 = vector.broadcast %23 : vector<1x256xf32> to vector<128x256xf32>
      %31 = arith.mulf %29, %30 : vector<128x256xf32>
      %32 = vector.broadcast %26 : vector<1x256xf32> to vector<128x256xf32>
      %33 = arith.addf %31, %32 : vector<128x256xf32>
      %cst_19 = arith.constant 0.000000e+00 : f32
      %34 = vector.broadcast %cst_19 : f32 to vector<128x256xf32>
      %35 = arith.maximumf %33, %34 : vector<128x256xf32>
      %c0_20 = arith.constant 0 : index
      %c0_21 = arith.constant 0 : index
      %36 = vector.load %arg7[%c0_20, %c0_21] : memref<256x128xf32, #tpu.memory_space<vmem>>, vector<256x128xf32>
      %cst_22 = arith.constant dense<0.000000e+00> : vector<128x128xf32>
      %37 = tpu.matmul %35, %36, %cst_22 {dimension_numbers = #tpu.dot_dimension_numbers<[1], [0], [0], [1], [0, 0, 1, 1], [], []>} : vector<128x256xf32>, vector<256x128xf32>, vector<128x128xf32> -> vector<128x128xf32>
      %c0_23 = arith.constant 0 : index
      %c0_24 = arith.constant 0 : index
      %38 = vector.load %arg8[%c0_23, %c0_24] : memref<1x128xf32, #tpu.memory_space<vmem>>, vector<1x128xf32>
      %39 = vector.broadcast %38 : vector<1x128xf32> to vector<128x128xf32>
      %40 = arith.addf %37, %39 : vector<128x128xf32>
      %c0_25 = arith.constant 0 : index
      %c0_26 = arith.constant 0 : index
      %41 = vector.load %arg3[%c0_25, %c0_26] : memref<128x128xf32, #tpu.memory_space<vmem>>, vector<128x128xf32>
      %42 = arith.mulf %40, %40 : vector<128x128xf32>
      %cst_27 = arith.constant dense<0.000000e+00> : vector<128xf32>
      %43 = vector.multi_reduction <add>, %42, %cst_27 [1] : vector<128x128xf32> to vector<128xf32>
      %44 = vector.shape_cast %43 : vector<128xf32> to vector<128x1xf32>
      %cst_28 = arith.constant 1.000000e-24 : f32
      %45 = vector.broadcast %cst_28 : f32 to vector<128x1xf32>
      %46 = arith.maximumf %44, %45 : vector<128x1xf32>
      %47 = math.rsqrt %46 : vector<128x1xf32>
      %48 = arith.mulf %41, %41 : vector<128x128xf32>
      %cst_29 = arith.constant dense<0.000000e+00> : vector<128xf32>
      %49 = vector.multi_reduction <add>, %48, %cst_29 [1] : vector<128x128xf32> to vector<128xf32>
      %50 = vector.shape_cast %49 : vector<128xf32> to vector<128x1xf32>
      %cst_30 = arith.constant 1.000000e-24 : f32
      %51 = vector.broadcast %cst_30 : f32 to vector<128x1xf32>
      %52 = arith.maximumf %50, %51 : vector<128x1xf32>
      %53 = math.rsqrt %52 : vector<128x1xf32>
      %54 = arith.mulf %40, %41 : vector<128x128xf32>
      %cst_31 = arith.constant dense<0.000000e+00> : vector<128xf32>
      %55 = vector.multi_reduction <add>, %54, %cst_31 [1] : vector<128x128xf32> to vector<128xf32>
      %56 = vector.shape_cast %55 : vector<128xf32> to vector<128x1xf32>
      %c0_32 = arith.constant 0 : index
      %c0_33 = arith.constant 0 : index
      %57 = memref.load %arg9[%c0_32, %c0_33] : memref<1x1xf32, #tpu.memory_space<smem>>
      %58 = arith.mulf %56, %47 : vector<128x1xf32>
      %59 = arith.mulf %58, %53 : vector<128x1xf32>
      %60 = vector.shape_cast %59 : vector<128x1xf32> to vector<1x128x1xf32>
      %cst_34 = arith.constant dense<0.000000e+00> : vector<1xf32>
      %61 = vector.multi_reduction <add>, %60, %cst_34 [1, 2] : vector<1x128x1xf32> to vector<1xf32>
      %62 = vector.shape_cast %61 : vector<1xf32> to vector<1x1x1xf32>
      %63 = vector.extract %62[0, 0, 0] : f32 from vector<1x1x1xf32>
      %cst_35 = arith.constant -7.812500e-03 : f32
      %64 = arith.mulf %cst_35, %63 : f32
      %65 = arith.addf %57, %64 : f32
      %c0_36 = arith.constant 0 : index
      %c0_37 = arith.constant 0 : index
      %66 = memref.load %arg9[%c0_36, %c0_37] : memref<1x1xf32, #tpu.memory_space<smem>>
      memref.store %65, %arg9[%c0_36, %c0_37] : memref<1x1xf32, #tpu.memory_space<smem>>
    } else {
    }
    return
  }
  func.func @transform_0(%arg0: i32, %arg1: i32) -> (i32, i32) {
    %c0_i32 = arith.constant 0 : i32
    %c0_i32_0 = arith.constant 0 : i32
    return %arg1, %c0_i32 : i32, i32
  }
  func.func @transform_1(%arg0: i32, %arg1: i32) -> (i32, i32) {
    %0 = arith.muli %arg1, %arg0 : i32
    %c0_i32 = arith.constant 0 : i32
    %c0_i32_0 = arith.constant 0 : i32
    return %0, %c0_i32 : i32, i32
  }
  func.func @transform_2(%arg0: i32, %arg1: i32) -> (i32, i32) {
    %c0_i32 = arith.constant 0 : i32
    %c0_i32_0 = arith.constant 0 : i32
    %c0_i32_1 = arith.constant 0 : i32
    return %c0_i32, %c0_i32_0 : i32, i32
  }
  func.func @transform_3(%arg0: i32, %arg1: i32) -> (i32, i32) {
    %c0_i32 = arith.constant 0 : i32
    %c0_i32_0 = arith.constant 0 : i32
    %c0_i32_1 = arith.constant 0 : i32
    return %c0_i32, %c0_i32_0 : i32, i32
  }
  func.func @transform_4(%arg0: i32, %arg1: i32) -> (i32, i32) {
    %c0_i32 = arith.constant 0 : i32
    %c0_i32_0 = arith.constant 0 : i32
    %c0_i32_1 = arith.constant 0 : i32
    return %c0_i32, %c0_i32_0 : i32, i32
  }
  func.func @transform_5(%arg0: i32, %arg1: i32) -> (i32, i32) {
    %c0_i32 = arith.constant 0 : i32
    %c0_i32_0 = arith.constant 0 : i32
    %c0_i32_1 = arith.constant 0 : i32
    return %c0_i32, %c0_i32_0 : i32, i32
  }
  func.func @transform_6(%arg0: i32, %arg1: i32) -> (i32, i32) {
    %c0_i32 = arith.constant 0 : i32
    %c0_i32_0 = arith.constant 0 : i32
    %c0_i32_1 = arith.constant 0 : i32
    return %c0_i32, %c0_i32_0 : i32, i32
  }
  func.func @transform_7(%arg0: i32, %arg1: i32) -> (i32, i32) {
    %c0_i32 = arith.constant 0 : i32
    %c0_i32_0 = arith.constant 0 : i32
    %c0_i32_1 = arith.constant 0 : i32
    return %c0_i32, %c0_i32_0 : i32, i32
  }
}

</mosaic_0001>

<bundles_post_ra>
// kernel: tpu_custom_call.1
= control target key start
LH: loop header
LB: loop body
LE: loop exit
PB: predicated region body
PF: predicated region fallthrough
CT: control target
= control target key end

     0   :  { %s2917_s0 = inlined_call_operand.hbm [shape: f32[256,128], index: 0, kind: input, shape index: {}]   ;;  %s2918_s1 = inlined_call_operand.hbm [shape: f32[256,128], index: 1, kind: input, shape index: {}]   ;;  %s2919_s2 = inlined_call_operand.hbm [shape: f32[128,256], index: 2, kind: input, shape index: {}]   ;;  %s2920_s3 = inlined_call_operand.vmem [shape: f32[1,256], index: 3, kind: input, shape index: {}]   ;;  %s2921_s4 = inlined_call_operand.vmem [shape: f32[1,256], index: 4, kind: input, shape index: {}]   ;;  %s2922_s5 = inlined_call_operand.hbm [shape: f32[256,128], index: 5, kind: input, shape index: {}]   ;;  %s2923_s6 = inlined_call_operand.vmem [shape: f32[1,128], index: 6, kind: input, shape index: {}]   ;;  %s2924_s7 = inlined_call_operand.hbm [shape: f32[1,1], index: 7, kind: output, shape index: {}]  }
   0x1   :  { %2936 = sst [smem:[#allocation23_spill]] %s2917_s0 }
   0x2   :  { %2937 = sst [smem:[#allocation24_spill]] %s2919_s2 }
   0x3   :  { %2938 = sst [smem:[#allocation25_spill]] %s2921_s4 }
   0x4   :  { %2939 = sst [smem:[#allocation26_spill]] %s2922_s5 }
   0x5   :  { %2940 = sst [smem:[#allocation27_spill]] %s2923_s6 }
   0x6   :  { %2941 = sst [smem:[#allocation28_spill]] %s2924_s7 }
   0x7   :  { %12 = vsyncpa [#allocation5], 0 }
   0x8   :  { %14 = vsyncpa [#allocation5 + $0x1], 0 }
   0x9   :  { %15 = vsyncpa [#allocation8], 0 }
   0xa   :  { %17 = vsyncpa [#allocation8 + $0x1], 0 }
   0xb   :  { %18 = vsyncpa [#allocation11], 0 }
   0xc   :  { %19 = vsyncpa [#allocation6], 0  ;;  %s2322_s24 = smov 0   ;;  %s2324_s25 = smov 0  }
   0xd   :  { %s2326_s26 = smov 0   ;;  %s2328_s27 = smov 0  }
   0xe   :  { %s2330_s28 = smov 0   ;;  %s2332_s29 = smov 0  }
   0xf   :  { %s2334_s30 = smov 0   ;;  %s2336_s8 = smov 0  }
  0x10   :  { %s2338_s9 = smov 0   ;;  %s2340_s10 = smov 0  }
  0x11   :  { %s2342_s11 = smov 0  }
  0x12 LB: > { %2942 = sst [smem:[#allocation18_spill]] %s2246_s29  ;;  %s2374_s12 = sadd.s32 4294967295, %s2266_s11   ;;  %s2266_s11 = sphi %s2342_s11, %s25_s11   ;;  %s2262_s10 = sphi %s2340_s10, %s2980_s10   ;;  %s2258_s9 = sphi %s2338_s9, %s2979_s9   ;;  %s2254_s8 = sphi %s2336_s8, %s2971_s8   ;;  %s2250_s30 = sphi %s2334_s30, %s2970_s30   ;;  %s2246_s29 = sphi %s2332_s29, %s2978_s29   ;;  %s2242_s28 = sphi %s2330_s28, %s2977_s28   ;;  %s2238_s27 = sphi %s2328_s27, %s2976_s27   ;;  %s2234_s26 = sphi %s2326_s26, %s2975_s26   ;;  %s2230_s25 = sphi %s2324_s25, %s2974_s25   ;;  %s2226_s24 = sphi %s2322_s24, %s2973_s24  }
  0x13   : > { %2943 = sst [smem:[#allocation19_spill]] %s2258_s9  ;;  %p57_p0 = scmp.ne.s32.totalorder %s2242_s28, %s2238_s27 }
  0x14   : > { %2944 = sst [smem:[#allocation20_spill]] %s2262_s10  ;;  %p2925_p1 = scmp.eq.s32.totalorder %s2374_s12, 0 }
  0x15   : > { %p85_p2 = scmp.ne.s32.totalorder %s2230_s25, %s2226_s24  ;;  %p1701_p3 = scmp.ge.s32.totalorder %s2266_s11, 1 }
  0x16   : > { %p222_p4 = scmp.lt.s32.totalorder %s2266_s11, 5  ;;  %p2383_p5 = por %p2925_p1, %p57_p0 }
  0x17   : > { %p2389_p6 = por %p85_p2, %p2925_p1  ;;  %s2268_s16 = smov [#allocation9]  }
  0x18   : > { %p2393_p7 = pnand %p1701_p3, %p222_p4  ;;  %s234_s17 = sshll.u32 %s2268_s16, 4  ;;  %s235_s17 = int_to_ptr.vmem [resolvable:$true] %s234_s17 }
  0x19   : > { %s2946_s14 = scalar_select %p2389_p6, 1, 0 }
  0x1a   : > { %p1855_p8 = pneg %p2393_p7  ;;  %s2269_s19 = smov [#allocation10]  }
  0x1b   : > { %s253_s20 = sshll.u32 %s2269_s19, 4  ;;  %s2053_s21 = scalar_lea.vmem %s235_s17, 4096  ;;  %s254_s20 = int_to_ptr.vmem [resolvable:$true] %s253_s20 }
  0x1c   : > { %p2401_p9 = pnand %p1855_p8, %p2925_p1  ;;  %p2054_p11 = scmp.ne.s32.totalorder %s235_s17, %s2053_s21 }
  0x1d   : > { %p2061_p0 = scmp.lt.s32.totalorder %s235_s17, %s235_s17  ;;  %p2062_p2 = scmp.lt.s32.totalorder %s2053_s21, %s2053_s21 }
  0x1e   : > { %p2044_p10 = pneg %p2401_p9 }
  0x1f   : > { %p2063_p3 = por %p2062_p2, %p2061_p0 }
  0x20   : > { %p2056_p12 = pnand %p2054_p11, %p2044_p10 }
  0x22   : > { %p2057_p13 = pneg %p2056_p12 }
  0x24   : > { %p2064_p4 = pnand %p2063_p3, %p2057_p13 }
  0x26   : > { %2067 = shalt.err (!%p2064_p4)
}
  0x27   : > { %s2270_s22 = smov 256   ;;  %s2271_s23 = smov 16  }
  0x28   : > { %s2949_s2 = sld [smem:[#allocation24_spill]]  ;;  %s2079_s16 = scalar_lea.vmem %s254_s20, 4096 }
  0x29   : > { %p2080_p8 = scmp.ne.s32.totalorder %s254_s20, %s2079_s16  ;;  %p2087_p1 = scmp.lt.s32.totalorder %s254_s20, %s254_s20 }
  0x2a   : > { %p2088_p0 = scmp.lt.s32.totalorder %s2079_s16, %s2079_s16 }
  0x2b   : > { %p2082_p11 = pnand %p2080_p8, %p2044_p10 }
  0x2c   : > { %p2089_p13 = por %p2088_p0, %p2087_p1 }
  0x2d   : > { %p2083_p12 = pneg %p2082_p11 }
  0x2e   : > { %1858 = dma.hbm_to_vmem [thread:$0]  (!%p2401_p9), %s2949_s2, 4096, %s235_s17, [#allocation8], %s2270_s22, %s2270_s22, %s2271_s23  }
  0x2f   : > { %p2090_p2 = pnand %p2089_p13, %p2083_p12 }
  0x31   : > { %2093 = shalt.err (!%p2090_p2)
}
  0x32   : > { %s2926_s19 = smov 128   ;;  %s2928_s17 = smov 8  }
  0x33   : > { %s2950_s5 = sld [smem:[#allocation26_spill]]  ;;  %s34_s23 = sadd.s32 1, %s2258_s9 }
  0x34   : > { %s44_s24 = sadd.s32 1, %s2246_s29  ;;  %p2428_p1 = scmp.ge.s32.totalorder %s34_s23, 2 }
  0x35   : > { %p51_p10 = scmp.ne.s32.totalorder %s2246_s29, %s2242_s28  ;;  %p2930_p3 = scmp.eq.s32.totalorder %s2266_s11, 0 }
  0x36   : > { %p1871_p4 = scmp.lt.s32.totalorder %s2266_s11, 4  ;;  %s2982_s23 = smov (%p2428_p1, %s34_s23), 0 }
  0x37   : > { %p53_p8 = por %p2930_p3, %p51_p10  ;;  %s270_s18 = sand.u32 1, %s2246_s29  }
  0x38   : > { %s41_s16 = ssub.s32 %s2258_s9, %s2982_s23  ;;  %s1723_s21 = sshll.u32 %s2258_s9, 11 }
  0x39   : > { %1861 = dma.hbm_to_vmem [thread:$0]  (!%p2401_p9), %s2950_s5, 4096, %s254_s20, [#allocation11], %s2926_s19, %s2926_s19, %s2928_s17  }
  0x3a   : > { %p42_p9 = scmp.eq.s32.totalorder %s41_s16, 0  ;;  %s1705_s20 = sshll.u32 %s270_s18, 7 }
  0x3b   : > { %s2953_s0 = sld [smem:[#allocation23_spill]]  ;;  %s274_s5 = scalar_lea.vmem [#allocation4], %s1705_s20 }
  0x3c   : > { %s2447_s22 = scalar_select %p42_p9, %s2246_s29, %s44_s24  }
  0x3d   : > { %s281_s7 = sshll.u32 %s274_s5, 4  ;;  %p2454_p11 = pnand %p1871_p4, %p53_p8  ;;  %s282_s7 = int_to_ptr.vmem [resolvable:$true] %s281_s7 }
  0x3e   : > { %2952 = sst [smem:[#allocation21_spill]] %s2447_s22  ;;  %s271_s4 = scalar_lea.sflag [#allocation5], %s270_s18 }
  0x3f   : > { %p2096_p12 = pneg %p2454_p11  ;;  %s2107_s16 = scalar_lea.vmem %s282_s7, 2048 }
  0x40   : > { %p2108_p0 = scmp.ne.s32.totalorder %s282_s7, %s2107_s16  ;;  %s2274_s24 = smov [#allocation4]  }
  0x41   : > { %s280_s2 = scalar_lea.hbm %s2953_s0, %s1723_s21  ;;  %s2112_s22 = sshll.u32 %s2274_s24, 4  ;;  %s2113_s22 = int_to_ptr.vmem [resolvable:$false] %s2112_s22 }
  0x42   : > { %p2110_p13 = pnand %p2108_p0, %p2096_p12  ;;  %s2114_s19 = scalar_lea.vmem %s2113_s22, 4096 }
  0x43   : > { %p2115_p10 = scmp.lt.s32.totalorder %s282_s7, %s2113_s22  ;;  %p2116_p9 = scmp.lt.s32.totalorder %s2114_s19, %s2107_s16 }
  0x44   : > { %p2111_p2 = pneg %p2110_p13 }
  0x45   : > { %p2117_p3 = por %p2116_p9, %p2115_p10 }
  0x47   : > { %p2118_p6 = pnand %p2117_p3, %p2111_p2 }
  0x49   : > { %2121 = shalt.err (!%p2118_p6)
}
  0x4a   : > { %s2955_s5 = smov 8   ;;  %s2956_s17 = smov 128  }
  0x4b   : > { %1865 = dma.hbm_to_vmem [thread:$0]  (!%p2454_p11), %s280_s2, 2048, %s282_s7, %s271_s4, %s2956_s17, %s2956_s17, %s2955_s5  }
  0x4c   : > { %s37_s18 = sadd.s32 1, %s2262_s10  ;;  %s67_s6 = smul.u32 %s2258_s9, %s2262_s10 }
  0x4d   : > { %s2984_s18 = smov (!%p2428_p1, %s37_s18), %s2262_s10  ;;  %s72_s20 = sadd.s32 1, %s2234_s26 }
  0x4e   : > { %p39_p6 = scmp.ge.s32.totalorder %s2984_s18, 2  ;;  %p79_p3 = scmp.ne.s32.totalorder %s2234_s26, %s2230_s25 }
  0x4f   : > { %s291_s21 = sand.u32 1, %s2266_s11   ;;  %s293_s22 = sand.u32 1, %s2234_s26  }
  0x50   : > { %s2986_s18 = smov (%p39_p6, %s2984_s18), 0  ;;  %p2958_p8 = scmp.eq.s32.totalorder %s2266_s11, 0 }
  0x51   : > { %2957 = sst [smem:[#allocation22_spill]] %s2986_s18  ;;  %s68_s16 = smul.u32 %s2986_s18, %s2982_s23 }
  0x52   : > { %p81_p12 = por %p79_p3, %p2958_p8  ;;  %s1708_s24 = sshll.u32 %s293_s22, 7 }
  0x53   : > { %s1724_s19 = sshll.u32 %s67_s6, 11  ;;  %s69_s2 = ssub.s32 %s67_s6, %s68_s16 }
  0x54   : > { %s302_s27 = scalar_lea.hbm %s2918_s1, %s1724_s19  ;;  %p70_p1 = scmp.eq.s32.totalorder %s69_s2, 0 }
  0x55   : > { %s295_s0 = scalar_lea.vmem [#allocation7], %s1708_s24  ;;  %p2487_p11 = pnand %p1871_p4, %p81_p12 }
  0x56   : > { %s303_s10 = sshll.u32 %s295_s0, 4  ;;  %s292_s18 = scalar_lea.sflag [#allocation8], %s291_s21  ;;  %s304_s10 = int_to_ptr.vmem [resolvable:$true] %s303_s10 }
  0x57   : > { %s2492_s29 = scalar_select %p70_p1, %s2234_s26, %s72_s20  }
  0x58   : > { %p2124_p0 = pneg %p2487_p11  ;;  %s2135_s6 = scalar_lea.vmem %s304_s10, 2048 }
  0x59   : > { %p2136_p13 = scmp.ne.s32.totalorder %s304_s10, %s2135_s6  ;;  %s2275_s22 = smov [#allocation7]  }
  0x5a   : > { %s2140_s16 = sshll.u32 %s2275_s22, 4  ;;  %s2141_s16 = int_to_ptr.vmem [resolvable:$false] %s2140_s16 }
  0x5b   : > { %p2138_p2 = pnand %p2136_p13, %p2124_p0  ;;  %s2142_s0 = scalar_lea.vmem %s2141_s16, 4096 }
  0x5c   : > { %p2143_p9 = scmp.lt.s32.totalorder %s304_s10, %s2141_s16  ;;  %p2144_p6 = scmp.lt.s32.totalorder %s2142_s0, %s2135_s6 }
  0x5d   : > { %p2139_p10 = pneg %p2138_p2 }
  0x5e   : > { %p2145_p4 = por %p2144_p6, %p2143_p9 }
  0x60   : > { %p2146_p3 = pnand %p2145_p4, %p2139_p10 }
  0x62   : > { %2149 = shalt.err (!%p2146_p3)
}
  0x63   : > { %1868 = dma.hbm_to_vmem [thread:$0]  (!%p2487_p11), %s302_s27, 2048, %s304_s10, %s292_s18, %s2956_s17, %s2956_s17, %s2955_s5  }
  0x64   : > { %315 = sbr.rel (%p2393_p7) target bundleno = 1318 (0x526), region = 48  ;;  %s317_s20 = sand.u32 (!%p2393_p7), 1, %s2242_s28  }
  0x65   : > { %s1712_s21 = sshll.u32 (!%p2393_p7), %s317_s20, 7  ;;  %s318_s24 = scalar_lea.sflag (!%p2393_p7), [#allocation5], %s317_s20 }
  0x66   : > { %s2504_s19 = scalar_lea.vmem (!%p2393_p7), [#allocation4], %s1712_s21 }
  0x69   : > { %2205 = dma.done.wait (%p2383_p5), %s318_s24, 2048  }
  0x6a   : > { %2207 = vsyncadd (%p2383_p5), %s318_s24, 4294965248  ;;  %s326_s9 = sand.u32 1, %s2374_s12   ;;  %s328_s10 = sand.u32 1, %s2230_s25  }
  0x6b   : > { %s1713_s5 = sshll.u32 %s328_s10, 7  ;;  %s327_s15 = scalar_lea.sflag [#allocation8], %s326_s9 }
  0x6c   : > { %s2512_s17 = scalar_lea.vmem [#allocation7], %s1713_s5  ;;  %p2960_p7 = scmp.ne.s32.totalorder %s2946_s14, 0 }
  0x6e   : > { %2209 = dma.done.wait (%p2960_p7), %s327_s15, 2048  }
  0x6f   : > { %2211 = vsyncadd (%p2960_p7), %s327_s15, 4294965248  ;;  %p2961_p8 = scmp.eq.s32.totalorder %s2374_s12, 0 }
  0x71   : > { %2213 = dma.done.wait (%p2961_p8), [#allocation8], 4096   ;;  %p2962_p12 = pmov %p2961_p8 }
  0x72   : > { %p2963_p5 = pmov %p2961_p8 }
  0x73   : > { %2215 = vsyncadd (%p2962_p12), [#allocation8], 4294963200 }
  0x74   : > { %2217 = dma.done.wait (%p2963_p5), [#allocation11], 4096   ;;  %p2964_p1 = pmov %p2963_p5 }
  0x75   : > { %p372_p11 = scmp.eq.s32.totalorder %s2254_s8, 0  ;;  %p373_p0 = scmp.eq.s32.totalorder %s2250_s30, 0 }
  0x76   : > { %2219 = vsyncadd (%p2964_p1), [#allocation11], 4294963200 }
  0x77   : > { %p374_p13 = pnand %p373_p0, %p372_p11 }
  0x78   : > { %s2276_s13 = smov (!%p374_p13), 0.0  }
  0x79   : > { %377 = sbr.rel (%p374_p13) target bundleno = 130 (0x82), region = 68  ;;  %385 = sst [smem:[#allocation12]] (!%p374_p13), %s2276_s13 }
  0x7e   : > { %v378_v0 = vlaneseq  ;;  %v2277_v1 = vmov 0.0  }
  0x80   : > { %vm380_vm0 = vcmp.lt.s32.totalorder %v378_v0, 256 }
  0x81   : > { %382 = vst.msk [vmem:[#allocation2] sm:$0x3] %vm380_vm0, %v2277_v1  ;;  %383 = vst.msk [vmem:[#allocation3] sm:$0x3] %vm380_vm0, %v2277_v1 }
  0x82 PF: > { %p1716_p2 = scmp.ne.s32.totalorder %s2254_s8, 0 }
  0x84   : > { %388 = sbr.rel (%p1716_p2) target bundleno = 434 (0x1b2), region = 72 }
  0x89   : > { %v436_v2 = vld [vmem:[#allocation9 + $0xf8] sm:$0xff]  ;;  %v435_v3 = vld [vmem:[#allocation9 + $0xf0] sm:$0xff]  ;;  %v434_v4 = vld [vmem:[#allocation9 + $0xe8] sm:$0xff]  ;;  %v2278_v24 = vmov 0.0  }
  0x8a   : > { %437 = vmatprep.subr.mxu0 %v436_v2  ;;  %v433_v5 = vld [vmem:[#allocation9 + $0xe0] sm:$0xff]  ;;  %1805 = vmatprep.subr.mxu1 %v436_v2  ;;  %v432_v6 = vld [vmem:[#allocation9 + $0xd8] sm:$0xff]  ;;  %v431_v7 = vld [vmem:[#allocation9 + $0xd0] sm:$0xff] }
  0x8b   : > { %438 = vmatpush1.msra.mxu0 %v435_v3  ;;  %1821 = vmatpush1.msra.mxu1 %v435_v3  ;;  %v430_v8 = vld [vmem:[#allocation9 + $0xc8] sm:$0xff]  ;;  %v429_v9 = vld [vmem:[#allocation9 + $0xc0] sm:$0xff]  ;;  %v428_v10 = vld [vmem:[#allocation9 + $0xb8] sm:$0xff] }
  0x8c   : > { %439 = vmatprep.subr.mxu0 %v434_v4  ;;  %1806 = vmatprep.subr.mxu1 %v434_v4  ;;  %v427_v11 = vld [vmem:[#allocation9 + $0xb0] sm:$0xff]  ;;  %v426_v12 = vld [vmem:[#allocation9 + $0xa8] sm:$0xff]  ;;  %v425_v13 = vld [vmem:[#allocation9 + $0xa0] sm:$0xff] }
  0x8d   : > { %440 = vmatpush1.msra.mxu0 %v433_v5  ;;  %1822 = vmatpush1.msra.mxu1 %v433_v5  ;;  %v424_v14 = vld [vmem:[#allocation9 + $0x98] sm:$0xff]  ;;  %v423_v15 = vld [vmem:[#allocation9 + $0x90] sm:$0xff]  ;;  %v422_v16 = vld [vmem:[#allocation9 + $0x88] sm:$0xff] }
  0x8e   : > { %441 = vmatprep.subr.mxu0 %v432_v6  ;;  %1807 = vmatprep.subr.mxu1 %v432_v6  ;;  %v421_v17 = vld [vmem:[#allocation9 + $0x80] sm:$0xff]  ;;  %v420_v18 = vld [vmem:[#allocation9 + $0x78] sm:$0xff]  ;;  %v419_v19 = vld [vmem:[#allocation9 + $0x70] sm:$0xff] }
  0x8f   : > { %442 = vmatpush1.msra.mxu0 %v431_v7  ;;  %1823 = vmatpush1.msra.mxu1 %v431_v7  ;;  %v418_v20 = vld [vmem:[#allocation9 + $0x68] sm:$0xff]  ;;  %v417_v21 = vld [vmem:[#allocation9 + $0x60] sm:$0xff]  ;;  %v416_v22 = vld [vmem:[#allocation9 + $0x58] sm:$0xff] }
  0x90   : > { %443 = vmatprep.subr.mxu0 %v430_v8  ;;  %1808 = vmatprep.subr.mxu1 %v430_v8  ;;  %v415_v23 = vld [vmem:[#allocation9 + $0x50] sm:$0xff]  ;;  %v414_v25 = vld [vmem:[#allocation9 + $0x48] sm:$0xff]  ;;  %v413_v26 = vld [vmem:[#allocation9 + $0x40] sm:$0xff] }
  0x91   : > { %444 = vmatpush1.msra.mxu0 %v429_v9  ;;  %1824 = vmatpush1.msra.mxu1 %v429_v9  ;;  %v412_v27 = vld [vmem:[#allocation9 + $0x38] sm:$0xff]  ;;  %v411_v28 = vld [vmem:[#allocation9 + $0x30] sm:$0xff]  ;;  %v410_v29 = vld [vmem:[#allocation9 + $0x28] sm:$0xff] }
  0x92   : > { %445 = vmatprep.subr.mxu0 %v428_v10  ;;  %1809 = vmatprep.subr.mxu1 %v428_v10  ;;  %v409_v30 = vld [vmem:[#allocation9 + $0x20] sm:$0xff]  ;;  %v408_v31 = vld [vmem:[#allocation9 + $0x18] sm:$0xff]  ;;  %v407_v32 = vld [vmem:[#allocation9 + $0x10] sm:$0xff] }
  0x93   : > { %446 = vmatpush1.msra.mxu0 %v427_v11  ;;  %1825 = vmatpush1.msra.mxu1 %v427_v11  ;;  %v406_v33 = vld [vmem:[#allocation9 + $0x8] sm:$0xff]  ;;  %v405_v34 = vld [vmem:[#allocation9] sm:$0xff]  ;;  %v391_v39 = vld [vmem:[%s2504_s19 + $0x10] sm:$0xff] }
  0x94   : > { %447 = vmatprep.subr.mxu0 %v426_v12  ;;  %1810 = vmatprep.subr.mxu1 %v426_v12  ;;  %v389_v35 = vld [vmem:[%s2504_s19] sm:$0xff]  ;;  %v390_v37 = vld [vmem:[%s2504_s19 + $0x8] sm:$0xff]  ;;  %v399_v40 = vld [vmem:[%s2504_s19 + $0x50] sm:$0xff] }
  0x95   : > { %448 = vmatpush1.msra.mxu0 %v425_v13  ;;  %1826 = vmatpush1.msra.mxu1 %v425_v13  ;;  %v397_v36 = vld [vmem:[%s2504_s19 + $0x40] sm:$0xff]  ;;  %v398_v38 = vld [vmem:[%s2504_s19 + $0x48] sm:$0xff]  ;;  %v392_v41 = vld [vmem:[%s2504_s19 + $0x18] sm:$0xff] }
  0x96   : > { %449 = vmatprep.subr.mxu0 %v424_v14  ;;  %1811 = vmatprep.subr.mxu1 %v424_v14  ;;  %v400_v42 = vld [vmem:[%s2504_s19 + $0x58] sm:$0xff]  ;;  %v393_v43 = vld [vmem:[%s2504_s19 + $0x20] sm:$0xff]  ;;  %v394_v45 = vld [vmem:[%s2504_s19 + $0x28] sm:$0xff] }
  0x97   : > { %450 = vmatpush1.msra.mxu0 %v423_v15  ;;  %1827 = vmatpush1.msra.mxu1 %v423_v15  ;;  %v401_v44 = vld [vmem:[%s2504_s19 + $0x60] sm:$0xff]  ;;  %v402_v46 = vld [vmem:[%s2504_s19 + $0x68] sm:$0xff]  ;;  %v395_v47 = vld [vmem:[%s2504_s19 + $0x30] sm:$0xff] }
  0x98   : > { %451 = vmatprep.subr.mxu0 %v422_v16  ;;  %1812 = vmatprep.subr.mxu1 %v422_v16  ;;  %v403_v48 = vld [vmem:[%s2504_s19 + $0x70] sm:$0xff]  ;;  %v396_v49 = vld [vmem:[%s2504_s19 + $0x38] sm:$0xff] }
  0x99   : > { %452 = vmatpush1.msra.mxu0 %v421_v17  ;;  %1828 = vmatpush1.msra.mxu1 %v421_v17  ;;  %v404_v50 = vld [vmem:[%s2504_s19 + $0x78] sm:$0xff] }
  0x9a   : > { %453 = vmatprep.subr.mxu0 %v420_v18  ;;  %1813 = vmatprep.subr.mxu1 %v420_v18 }
  0x9b   : > { %454 = vmatpush1.msra.mxu0 %v419_v19  ;;  %1829 = vmatpush1.msra.mxu1 %v419_v19 }
  0x9c   : > { %455 = vmatprep.subr.mxu0 %v418_v20  ;;  %501 = vmatprep.mubr.f32.mxu0 %v2278_v24 }
  0x9d   : > { %456 = vmatpush1.msra.mxu0 %v417_v21  ;;  %1814 = vmatprep.subr.mxu1 %v418_v20 }
  0x9e   : > { %457 = vmatprep.subr.mxu0 %v416_v22  ;;  %1830 = vmatpush1.msra.mxu1 %v417_v21 }
  0x9f   : > { %458 = vmatpush1.msra.mxu0 %v415_v23  ;;  %1815 = vmatprep.subr.mxu1 %v416_v22 }
  0xa0   : > { %459 = vmatprep.subr.mxu0 %v414_v25  ;;  %1831 = vmatpush1.msra.mxu1 %v415_v23 }
  0xa1   : > { %460 = vmatpush1.msra.mxu0 %v413_v26  ;;  %1816 = vmatprep.subr.mxu1 %v414_v25 }
  0xa2   : > { %461 = vmatprep.subr.mxu0 %v412_v27  ;;  %1832 = vmatpush1.msra.mxu1 %v413_v26 }
  0xa3   : > { %462 = vmatpush1.msra.mxu0 %v411_v28  ;;  %1817 = vmatprep.subr.mxu1 %v412_v27 }
  0xa4   : > { %463 = vmatprep.subr.mxu0 %v410_v29  ;;  %1833 = vmatpush1.msra.mxu1 %v411_v28 }
  0xa5   : > { %464 = vmatpush1.msra.mxu0 %v409_v30  ;;  %1818 = vmatprep.subr.mxu1 %v410_v29 }
  0xa6   : > { %465 = vmatprep.subr.mxu0 %v408_v31  ;;  %1834 = vmatpush1.msra.mxu1 %v409_v30 }
  0xa7   : > { %466 = vmatpush1.msra.mxu0 %v407_v32  ;;  %1819 = vmatprep.subr.mxu1 %v408_v31 }
  0xa8   : > { %467 = vmatprep.subr.mxu0 %v406_v33  ;;  %1835 = vmatpush1.msra.mxu1 %v407_v32 }
  0xa9   : > { %468 = vmatpush1.msra.mxu0 %v405_v34  ;;  %1820 = vmatprep.subr.mxu1 %v406_v33 }
  0xaa   : > { %502 = vmatmul.mubr.f32.vlgmr.msra.gmra.mxu0 %v389_v35  ;;  %1836 = vmatpush1.msra.mxu1 %v405_v34 }
  0xab   : > { %507 = vmatprep.mubr.f32.mxu0 %v2278_v24  ;;  %549 = vmatprep.mubr.f32.mxu1 %v2278_v24 }
  0xac   : > { %550 = vmatmul.mubr.f32.vlgmr.msra.gmra.mxu1 %v397_v36 }
  0xad   : > { %555 = vmatprep.mubr.f32.mxu1 %v2278_v24 }
  0xae   : > { %508 = vmatmul.mubr.f32.gmra.mxu0 %v390_v37 }
  0xaf   : > { %513 = vmatprep.mubr.f32.mxu0 %v2278_v24 }
  0xb0   : > { %556 = vmatmul.mubr.f32.gmra.mxu1 %v398_v38 }
  0xb1   : > { %561 = vmatprep.mubr.f32.mxu1 %v2278_v24 }
  0xb2   : > { %514 = vmatmul.mubr.f32.gmra.mxu0 %v391_v39 }
  0xb3   : > { %519 = vmatprep.mubr.f32.mxu0 %v2278_v24 }
  0xb4   : > { %562 = vmatmul.mubr.f32.gmra.mxu1 %v399_v40 }
  0xb5   : > { %567 = vmatprep.mubr.f32.mxu1 %v2278_v24 }
  0xb6   : > { %520 = vmatmul.mubr.f32.gmra.mxu0 %v392_v41 }
  0xb7   : > { %525 = vmatprep.mubr.f32.mxu0 %v2278_v24 }
  0xb8   : > { %568 = vmatmul.mubr.f32.gmra.mxu1 %v400_v42 }
  0xb9   : > { %573 = vmatprep.mubr.f32.mxu1 %v2278_v24 }
  0xba   : > { %526 = vmatmul.mubr.f32.gmra.mxu0 %v393_v43 }
  0xbb   : > { %531 = vmatprep.mubr.f32.mxu0 %v2278_v24 }
  0xbc   : > { %574 = vmatmul.mubr.f32.gmra.mxu1 %v401_v44 }
  0xbd   : > { %579 = vmatprep.mubr.f32.mxu1 %v2278_v24 }
  0xbe   : > { %532 = vmatmul.mubr.f32.gmra.mxu0 %v394_v45 }
  0xbf   : > { %537 = vmatprep.mubr.f32.mxu0 %v2278_v24 }
  0xc0   : > { %580 = vmatmul.mubr.f32.gmra.mxu1 %v402_v46 }
  0xc1   : > { %585 = vmatprep.mubr.f32.mxu1 %v2278_v24 }
  0xc2   : > { %538 = vmatmul.mubr.f32.gmra.mxu0 %v395_v47 }
  0xc3   : > { %543 = vmatprep.mubr.f32.mxu0 %v2278_v24 }
  0xc4   : > { %586 = vmatmul.mubr.f32.gmra.mxu1 %v403_v48 }
  0xc5   : > { %591 = vmatprep.mubr.f32.mxu1 %v2278_v24 }
  0xc6   : > { %544 = vmatmul.mubr.f32.gmra.mxu0 %v396_v49 }
  0xc8   : > { %592 = vmatmul.mubr.f32.gmra.mxu1 %v404_v50 }
 0x16a   : > { %v503_v51 = vpop.f32.mrf.mxu0 }
 0x16b   : > { %v666_v6 = vmul.f32 %v503_v51, %v503_v51 }
 0x16c   : > { %v505_v52 = vpop.f32.mrf.mxu0  ;;  %v2561_v53 = vpop.f32.mrf.mxu1 }
 0x16d   : > { %v667_v9 = vmul.f32 %v505_v52, %v505_v52 }
 0x16e   : > { %v509_v54 = vpop.f32.mrf.mxu0  ;;  %v2563_v55 = vpop.f32.mrf.mxu1 }
 0x16f   : > { %v668_v2 = vmul.f32 %v509_v54, %v509_v54  ;;  %v599_v7 = vadd.f32 %v509_v54, %v503_v51  ;;  %v682_v54 = vmul.f32 %v2561_v53, %v2561_v53 }
 0x170   : > { %v511_v56 = vpop.f32.mrf.mxu0  ;;  %v2565_v57 = vpop.f32.mrf.mxu1 }
 0x171   : > { %v669_v3 = vmul.f32 %v511_v56, %v511_v56  ;;  %v698_v13 = vadd.f32 %v668_v2, %v666_v6  ;;  %v620_v14 = vadd.f32 %v511_v56, %v505_v52  ;;  %v684_v6 = vmul.f32 %v2565_v57, %v2565_v57 }
 0x172   : > { %v515_v58 = vpop.f32.mrf.mxu0  ;;  %v2567_v59 = vpop.f32.mrf.mxu1 }
 0x173   : > { %v670_v8 = vmul.f32 %v515_v58, %v515_v58  ;;  %v600_v15 = vadd.f32 %v599_v7, %v515_v58  ;;  %v719_v17 = vadd.f32 %v669_v3, %v667_v9 }
 0x174   : > { %v517_v60 = vpop.f32.mrf.mxu0  ;;  %v2569_v61 = vpop.f32.mrf.mxu1 }
 0x175   : > { %v671_v10 = vmul.f32 %v517_v60, %v517_v60  ;;  %v699_v21 = vadd.f32 %v698_v13, %v670_v8  ;;  %v621_v22 = vadd.f32 %v620_v14, %v517_v60 }
 0x176   : > { %v521_v62 = vpop.f32.mrf.mxu0  ;;  %v2571_v63 = vpop.f32.mrf.mxu1 }
 0x177   : > { %v672_v16 = vmul.f32 %v521_v62, %v521_v62  ;;  %v601_v23 = vadd.f32 %v600_v15, %v521_v62  ;;  %v720_v25 = vadd.f32 %v719_v17, %v671_v10 }
 0x178   : > { %v523_v0 = vpop.f32.mrf.mxu0  ;;  %v2573_v1 = vpop.f32.mrf.mxu1 }
 0x179   : > { %v673_v18 = vmul.f32 %v523_v0, %v523_v0  ;;  %v700_v28 = vadd.f32 %v699_v21, %v672_v16  ;;  %v622_v29 = vadd.f32 %v621_v22, %v523_v0 }
 0x17a   : > { %v527_v4 = vpop.f32.mrf.mxu0  ;;  %v2575_v5 = vpop.f32.mrf.mxu1 }
 0x17b   : > { %v674_v24 = vmul.f32 %v527_v4, %v527_v4  ;;  %v602_v30 = vadd.f32 %v601_v23, %v527_v4  ;;  %v721_v33 = vadd.f32 %v720_v25, %v673_v18  ;;  %v683_v4 = vmul.f32 %v2563_v55, %v2563_v55 }
 0x17c   : > { %v529_v11 = vpop.f32.mrf.mxu0  ;;  %v2577_v12 = vpop.f32.mrf.mxu1  ;;  %v689_v23 = vmul.f32 %v2575_v5, %v2575_v5 }
 0x17d   : > { %v675_v26 = vmul.f32 %v529_v11, %v529_v11  ;;  %v701_v36 = vadd.f32 %v700_v28, %v674_v24  ;;  %v623_v37 = vadd.f32 %v622_v29, %v529_v11  ;;  %v685_v11 = vmul.f32 %v2567_v59, %v2567_v59 }
 0x17e   : > { %v533_v19 = vpop.f32.mrf.mxu0  ;;  %v2579_v20 = vpop.f32.mrf.mxu1 }
 0x17f   : > { %v676_v31 = vmul.f32 %v533_v19, %v533_v19  ;;  %v603_v38 = vadd.f32 %v602_v30, %v533_v19  ;;  %v722_v40 = vadd.f32 %v721_v33, %v675_v26  ;;  %v691_v28 = vmul.f32 %v2579_v20, %v2579_v20 }
 0x180   : > { %v535_v27 = vpop.f32.mrf.mxu0  ;;  %v581_v32 = vpop.f32.mrf.mxu1 }
 0x181   : > { %v677_v34 = vmul.f32 %v535_v27, %v535_v27  ;;  %v702_v42 = vadd.f32 %v701_v36, %v676_v31  ;;  %v624_v43 = vadd.f32 %v623_v37, %v535_v27 }
 0x182   : > { %v539_v35 = vpop.f32.mrf.mxu0  ;;  %v583_v46 = vpop.f32.mrf.mxu1 }
 0x183   : > { %v678_v39 = vmul.f32 %v539_v35, %v539_v35  ;;  %v604_v44 = vadd.f32 %v603_v38, %v539_v35  ;;  %v723_v47 = vadd.f32 %v722_v40, %v677_v34  ;;  %v693_v33 = vmul.f32 %v583_v46, %v583_v46 }
 0x184   : > { %v541_v41 = vpop.f32.mrf.mxu0  ;;  %v587_v3 = vpop.f32.mrf.mxu1 }
 0x185   : > { %v679_v45 = vmul.f32 %v541_v41, %v541_v41  ;;  %v703_v49 = vadd.f32 %v702_v42, %v678_v39  ;;  %v625_v50 = vadd.f32 %v624_v43, %v541_v41  ;;  %v694_v34 = vmul.f32 %v587_v3, %v587_v3 }
 0x186   : > { %v545_v48 = vpop.f32.mrf.mxu0  ;;  %v589_v17 = vpop.f32.mrf.mxu1 }
 0x187   : > { %v605_v51 = vadd.f32 %v604_v44, %v545_v48  ;;  %v680_v52 = vmul.f32 %v545_v48, %v545_v48  ;;  %v724_v56 = vadd.f32 %v723_v47, %v679_v45 }
 0x188   : > { %v547_v58 = vpop.f32.mrf.mxu0  ;;  %v593_v27 = vpop.f32.mrf.mxu1 }
 0x189   : > { %v606_v60 = vadd.f32 %v605_v51, %v2561_v53  ;;  %v704_v62 = vadd.f32 %v703_v49, %v680_v52  ;;  %v626_v0 = vadd.f32 %v625_v50, %v547_v58  ;;  %v681_v2 = vmul.f32 %v547_v58, %v547_v58 }
 0x18a   : > { %v686_v53 = vmul.f32 %v2569_v61, %v2569_v61  ;;  %v696_v35 = vmul.f32 %v593_v27, %v593_v27  ;;  %v595_v39 = vpop.f32.mrf.mxu1  ;;  %v2279_v52 = vmov 1966171168  }
 0x18b   : > { %v607_v7 = vadd.f32 %v606_v60, %v2565_v57  ;;  %v705_v8 = vadd.f32 %v704_v62, %v682_v54  ;;  %v627_v9 = vadd.f32 %v626_v0, %v2563_v55  ;;  %v725_v10 = vadd.f32 %v724_v56, %v681_v2 }
 0x18c   : > { %v687_v57 = vmul.f32 %v2571_v63, %v2571_v63  ;;  %v688_v55 = vmul.f32 %v2573_v1, %v2573_v1  ;;  %v697_v44 = vmul.f32 %v595_v39, %v595_v39  ;;  %v645_v54 = vunpack.c.l.s4 %v2279_v52 }
 0x18d   : > { %v706_v13 = vadd.f32 %v705_v8, %v684_v6  ;;  %v628_v14 = vadd.f32 %v627_v9, %v2567_v59  ;;  %v726_v15 = vadd.f32 %v725_v10, %v683_v4  ;;  %v608_v16 = vadd.f32 %v607_v7, %v2569_v61 }
 0x18e   : > { %v690_v59 = vmul.f32 %v2577_v12, %v2577_v12  ;;  %v647_v56 = vlaneseq  ;;  %v646_v6 = vunpack.c.0.s8 %v645_v54 }
 0x18f   : > { %v727_v18 = vadd.f32 %v726_v15, %v685_v11  ;;  %v609_v19 = vadd.f32 %v608_v16, %v2573_v1  ;;  %v707_v21 = vadd.f32 %v706_v13, %v686_v53  ;;  %v629_v22 = vadd.f32 %v628_v14, %v2571_v63 }
 0x190   : > { %v692_v1 = vmul.f32 %v581_v32, %v581_v32  ;;  %v648_v7 = vshrl.u32 %v647_v56, 7  ;;  %vm662_vm1 = vcmp.lt.s32.totalorder %v647_v56, 256 }
 0x191   : > { %v610_v61 = vadd.f32 %v609_v19, %v2577_v12  ;;  %v708_v24 = vadd.f32 %v707_v21, %v688_v55  ;;  %v630_v25 = vadd.f32 %v629_v22, %v2575_v5  ;;  %v728_v26 = vadd.f32 %v727_v18, %v687_v57 }
 0x192   : > { %v695_v5 = vmul.f32 %v589_v17, %v589_v17 }
 0x193   : > { %v709_v29 = vadd.f32 %v708_v24, %v690_v59  ;;  %v631_v63 = vadd.f32 %v630_v25, %v2579_v20  ;;  %v729_v30 = vadd.f32 %v728_v26, %v689_v23  ;;  %v611_v31 = vadd.f32 %v610_v61, %v581_v32  ;;  %v598_v23 = vld [vmem:[#allocation2] sm:$0x3]  ;;  %v665_v24 = vld [vmem:[#allocation3] sm:$0x3] }
 0x195   : > { %v730_v36 = vadd.f32 %v729_v30, %v691_v28  ;;  %v710_v37 = vadd.f32 %v709_v29, %v692_v1  ;;  %v632_v12 = vadd.f32 %v631_v63, %v583_v46  ;;  %v612_v38 = vadd.f32 %v611_v31, %v587_v3 }
 0x197   : > { %v731_v40 = vadd.f32 %v730_v36, %v693_v33  ;;  %v711_v41 = vadd.f32 %v710_v37, %v694_v34  ;;  %v633_v42 = vadd.f32 %v632_v12, %v589_v17  ;;  %v613_v43 = vadd.f32 %v612_v38, %v593_v27 }
 0x198   : > { %v649_v17 = vsub.s32 %v646_v6, %v648_v7 }
 0x199   : > { %v732_v45 = vadd.f32 %v731_v40, %v695_v5  ;;  %v614_v47 = vrot.slane %v613_v43, 4  ;;  %v712_v48 = vadd.f32 %v711_v41, %v696_v35  ;;  %v634_v20 = vadd.f32 %v633_v42, %v595_v39 }
 0x19b   : > { %v615_v49 = vadd.f32 %v614_v47, %v613_v43  ;;  %v713_v32 = vrot.slane %v712_v48, 4  ;;  %v635_v50 = vrot.slane %v634_v20, 4  ;;  %v733_v51 = vadd.f32 %v732_v45, %v697_v44 }
 0x19d   : > { %v616_v46 = vrot.slane %v615_v49, 2  ;;  %v714_v58 = vadd.f32 %v713_v32, %v712_v48  ;;  %v636_v60 = vadd.f32 %v635_v50, %v634_v20  ;;  %v734_v62 = vrot.slane %v733_v51, 4 }
 0x19f   : > { %v617_v0 = vadd.f32 %v616_v46, %v615_v49  ;;  %v715_v2 = vrot.slane %v714_v58, 2  ;;  %v637_v3 = vrot.slane %v636_v60, 2  ;;  %v735_v4 = vadd.f32 %v734_v62, %v733_v51 }
 0x1a1   : > { %v618_v8 = vrot.slane %v617_v0, 1  ;;  %v716_v9 = vadd.f32 %v715_v2, %v714_v58  ;;  %v638_v10 = vadd.f32 %v637_v3, %v636_v60  ;;  %v736_v11 = vrot.slane %v735_v4, 2 }
 0x1a3   : > { %v717_v53 = vrot.slane %v716_v9, 1  ;;  %v639_v13 = vrot.slane %v638_v10, 1  ;;  %v737_v14 = vadd.f32 %v736_v11, %v735_v4  ;;  %v619_v15 = vadd.f32 %v618_v8, %v617_v0 }
 0x1a5   : > { %v640_v16 = vadd.f32 %v639_v13, %v638_v10  ;;  %v738_v57 = vrot.slane %v737_v14, 1  ;;  %v718_v55 = vadd.f32 %v717_v53, %v716_v9 }
 0x1a7   : > { %v643_v18 = vcombine.low %v619_v15, %v640_v16  ;;  %v739_v19 = vadd.f32 %v738_v57, %v737_v14 }
 0x1a9   : > { %v650_v21 = vrot.slane %v643_v18, %v649_v17  ;;  %v742_v22 = vcombine.low %v718_v55, %v739_v19 }
 0x1ab   : > { %v657_v59 = vrot.slane %v650_v21, %v649_v17  ;;  %v749_v61 = vrot.slane %v742_v22, %v649_v17 }
 0x1ad   : > { %v659_v25 = vadd.f32 %v657_v59, %v598_v23  ;;  %v756_v26 = vrot.slane %v749_v61, %v649_v17 }
 0x1af   : > { %664 = vst.msk [vmem:[#allocation2] sm:$0x3] %vm662_vm1, %v659_v25  ;;  %v758_v27 = vadd.f32 %v756_v26, %v665_v24 }
 0x1b1   : > { %759 = vst.msk [vmem:[#allocation3] sm:$0x3] %vm662_vm1, %v758_v27 }
 0x1b2 PF: > { %p1717_p10 = scmp.ne.s32.totalorder %s2254_s8, 1 }
 0x1b3   : > { %s2965_s2 = sld [smem:[#allocation25_spill]] (!%p1717_p10) }
 0x1b4   : > { %763 = sbr.rel (%p1717_p10) target bundleno = 1307 (0x51b), region = 76  ;;  %s2966_s27 = sld [smem:[#allocation27_spill]] (!%p1717_p10) }
 0x1b5   : > { %s1512_s6 = sld [smem:[#allocation12]] (!%p1717_p10) }
 0x1b9   : > { %v824_v28 = vld [vmem:[#allocation9 + $0xf8] sm:$0xff]  ;;  %v823_v1 = vld [vmem:[#allocation9 + $0xf0] sm:$0xff]  ;;  %v822_v29 = vld [vmem:[#allocation9 + $0xe8] sm:$0xff]  ;;  %v2280_v30 = vmov 0.0   ;;  %vm1545_vm2 = vcmask 7168  }
 0x1ba   : > { %825 = vmatprep.subr.mxu0 %v824_v28  ;;  %v821_v63 = vld [vmem:[#allocation9 + $0xe0] sm:$0xff]  ;;  %889 = vmatprep.mubr.f32.mxu0 %v2280_v30  ;;  %v820_v31 = vld [vmem:[#allocation9 + $0xd8] sm:$0xff]  ;;  %v819_v33 = vld [vmem:[#allocation9 + $0xd0] sm:$0xff] }
 0x1bb   : > { %826 = vmatpush1.msra.mxu0 %v823_v1  ;;  %v818_v34 = vld [vmem:[#allocation9 + $0xc8] sm:$0xff]  ;;  %v817_v35 = vld [vmem:[#allocation9 + $0xc0] sm:$0xff]  ;;  %v816_v36 = vld [vmem:[#allocation9 + $0xb8] sm:$0xff] }
 0x1bc   : > { %827 = vmatprep.subr.mxu0 %v822_v29  ;;  %v815_v37 = vld [vmem:[#allocation9 + $0xb0] sm:$0xff]  ;;  %v814_v12 = vld [vmem:[#allocation9 + $0xa8] sm:$0xff]  ;;  %v813_v38 = vld [vmem:[#allocation9 + $0xa0] sm:$0xff] }
 0x1bd   : > { %828 = vmatpush1.msra.mxu0 %v821_v63  ;;  %v812_v39 = vld [vmem:[#allocation9 + $0x98] sm:$0xff]  ;;  %v811_v5 = vld [vmem:[#allocation9 + $0x90] sm:$0xff]  ;;  %v810_v40 = vld [vmem:[#allocation9 + $0x88] sm:$0xff] }
 0x1be   : > { %829 = vmatprep.subr.mxu0 %v820_v31  ;;  %v809_v41 = vld [vmem:[#allocation9 + $0x80] sm:$0xff]  ;;  %v808_v42 = vld [vmem:[#allocation9 + $0x78] sm:$0xff]  ;;  %v807_v43 = vld [vmem:[#allocation9 + $0x70] sm:$0xff] }
 0x1bf   : > { %830 = vmatpush1.msra.mxu0 %v819_v33  ;;  %v806_v44 = vld [vmem:[#allocation9 + $0x68] sm:$0xff]  ;;  %v1135_v45 = vld [vmem:[#allocation10 + $0xf8] sm:$0xff]  ;;  %v1134_v48 = vld [vmem:[#allocation10 + $0xf0] sm:$0xff] }
 0x1c0   : > { %831 = vmatprep.subr.mxu0 %v818_v34  ;;  %v1119_v47 = vld [vmem:[#allocation10 + $0x78] sm:$0xff]  ;;  %v805_v20 = vld [vmem:[#allocation9 + $0x60] sm:$0xff]  ;;  %1725 = vmatprep.subr.mxu1 %v1135_v45  ;;  %v1118_v49 = vld [vmem:[#allocation10 + $0x70] sm:$0xff] }
 0x1c1   : > { %832 = vmatpush1.msra.mxu0 %v817_v35  ;;  %v804_v32 = vld [vmem:[#allocation9 + $0x58] sm:$0xff]  ;;  %1726 = vmatpush3.msra.mxu1 %v1119_v47  ;;  %v1133_v50 = vld [vmem:[#allocation10 + $0xe8] sm:$0xff]  ;;  %v803_v51 = vld [vmem:[#allocation9 + $0x50] sm:$0xff] }
 0x1c2   : > { %833 = vmatprep.subr.mxu0 %v816_v36  ;;  %1727 = vmatprep.subr.mxu1 %v1134_v48  ;;  %v1117_v52 = vld [vmem:[#allocation10 + $0x68] sm:$0xff]  ;;  %v1132_v56 = vld [vmem:[#allocation10 + $0xe0] sm:$0xff]  ;;  %v800_v60 = vld [vmem:[#allocation9 + $0x38] sm:$0xff] }
 0x1c3   : > { %834 = vmatpush1.msra.mxu0 %v815_v37  ;;  %v802_v54 = vld [vmem:[#allocation9 + $0x48] sm:$0xff]  ;;  %1728 = vmatpush3.msra.mxu1 %v1118_v49  ;;  %v801_v46 = vld [vmem:[#allocation9 + $0x40] sm:$0xff]  ;;  %v1131_v62 = vld [vmem:[#allocation10 + $0xd8] sm:$0xff] }
 0x1c4   : > { %835 = vmatprep.subr.mxu0 %v814_v12  ;;  %1729 = vmatprep.subr.mxu1 %v1133_v50  ;;  %v1116_v58 = vld [vmem:[#allocation10 + $0x60] sm:$0xff]  ;;  %v799_v0 = vld [vmem:[#allocation9 + $0x30] sm:$0xff]  ;;  %v1115_v2 = vld [vmem:[#allocation10 + $0x58] sm:$0xff] }
 0x1c5   : > { %836 = vmatpush1.msra.mxu0 %v813_v38  ;;  %1730 = vmatpush3.msra.mxu1 %v1117_v52  ;;  %v798_v3 = vld [vmem:[#allocation9 + $0x28] sm:$0xff]  ;;  %v1130_v4 = vld [vmem:[#allocation10 + $0xd0] sm:$0xff]  ;;  %v797_v6 = vld [vmem:[#allocation9 + $0x20] sm:$0xff] }
 0x1c6   : > { %837 = vmatprep.subr.mxu0 %v812_v39  ;;  %1731 = vmatprep.subr.mxu1 %v1132_v56  ;;  %v1114_v7 = vld [vmem:[#allocation10 + $0x50] sm:$0xff]  ;;  %v796_v8 = vld [vmem:[#allocation9 + $0x18] sm:$0xff]  ;;  %v1129_v9 = vld [vmem:[#allocation10 + $0xc8] sm:$0xff] }
 0x1c7   : > { %838 = vmatpush1.msra.mxu0 %v811_v5  ;;  %1732 = vmatpush3.msra.mxu1 %v1116_v58  ;;  %v795_v10 = vld [vmem:[#allocation9 + $0x10] sm:$0xff]  ;;  %v1113_v11 = vld [vmem:[#allocation10 + $0x48] sm:$0xff]  ;;  %v1128_v13 = vld [vmem:[#allocation10 + $0xc0] sm:$0xff] }
 0x1c8   : > { %839 = vmatprep.subr.mxu0 %v810_v40  ;;  %1733 = vmatprep.subr.mxu1 %v1131_v62  ;;  %v794_v53 = vld [vmem:[#allocation9 + $0x8] sm:$0xff]  ;;  %v793_v14 = vld [vmem:[#allocation9] sm:$0xff]  ;;  %v1127_v17 = vld [vmem:[#allocation10 + $0xb8] sm:$0xff] }
 0x1c9   : > { %840 = vmatpush1.msra.mxu0 %v809_v41  ;;  %1734 = vmatpush3.msra.mxu1 %v1115_v2  ;;  %v1112_v15 = vld [vmem:[#allocation10 + $0x40] sm:$0xff]  ;;  %v1111_v57 = vld [vmem:[#allocation10 + $0x38] sm:$0xff]  ;;  %v1126_v55 = vld [vmem:[#allocation10 + $0xb0] sm:$0xff] }
 0x1ca   : > { %841 = vmatprep.subr.mxu0 %v808_v42  ;;  %1735 = vmatprep.subr.mxu1 %v1130_v4  ;;  %v777_v16 = vld [vmem:[%s2504_s19] sm:$0xff]  ;;  %v1110_v18 = vld [vmem:[#allocation10 + $0x30] sm:$0xff]  ;;  %v778_v19 = vld [vmem:[%s2504_s19 + $0x8] sm:$0xff] }
 0x1cb   : > { %842 = vmatpush1.msra.mxu0 %v807_v43  ;;  %1736 = vmatpush3.msra.mxu1 %v1114_v7  ;;  %v1125_v21 = vld [vmem:[#allocation10 + $0xa8] sm:$0xff]  ;;  %v779_v23 = vld [vmem:[%s2504_s19 + $0x10] sm:$0xff]  ;;  %v780_v59 = vld [vmem:[%s2504_s19 + $0x18] sm:$0xff] }
 0x1cc   : > { %843 = vmatprep.subr.mxu0 %v806_v44  ;;  %1737 = vmatprep.subr.mxu1 %v1129_v9  ;;  %v1109_v22 = vld [vmem:[#allocation10 + $0x28] sm:$0xff]  ;;  %v781_v61 = vld [vmem:[%s2504_s19 + $0x20] sm:$0xff]  ;;  %v783_v25 = vld [vmem:[%s2504_s19 + $0x30] sm:$0xff] }
 0x1cd   : > { %844 = vmatpush1.msra.mxu0 %v805_v20  ;;  %1738 = vmatpush3.msra.mxu1 %v1113_v11  ;;  %v782_v24 = vld [vmem:[%s2504_s19 + $0x28] sm:$0xff]  ;;  %v784_v26 = vld [vmem:[%s2504_s19 + $0x38] sm:$0xff]  ;;  %v785_v27 = vld [vmem:[%s2504_s19 + $0x40] sm:$0xff] }
 0x1ce   : > { %845 = vmatprep.subr.mxu0 %v804_v32  ;;  %1739 = vmatprep.subr.mxu1 %v1128_v13  ;;  %v786_v28 = vld [vmem:[%s2504_s19 + $0x48] sm:$0xff]  ;;  %v787_v1 = vld [vmem:[%s2504_s19 + $0x50] sm:$0xff]  ;;  %v788_v29 = vld [vmem:[%s2504_s19 + $0x58] sm:$0xff] }
 0x1cf   : > { %846 = vmatpush1.msra.mxu0 %v803_v51  ;;  %1740 = vmatpush3.msra.mxu1 %v1112_v15  ;;  %v789_v63 = vld [vmem:[%s2504_s19 + $0x60] sm:$0xff]  ;;  %v790_v31 = vld [vmem:[%s2504_s19 + $0x68] sm:$0xff]  ;;  %v791_v33 = vld [vmem:[%s2504_s19 + $0x70] sm:$0xff]  ;;  %v987_v15 = vlaneseq }
 0x1d0   : > { %847 = vmatprep.subr.mxu0 %v802_v54  ;;  %1741 = vmatprep.subr.mxu1 %v1127_v17  ;;  %v792_v34 = vld [vmem:[%s2504_s19 + $0x78] sm:$0xff]  ;;  %v1124_v35 = vld [vmem:[#allocation10 + $0xa0] sm:$0xff]  ;;  %v1122_v38 = vld [vmem:[#allocation10 + $0x90] sm:$0xff] }
 0x1d1   : > { %848 = vmatpush1.msra.mxu0 %v801_v46  ;;  %1742 = vmatpush3.msra.mxu1 %v1111_v57  ;;  %v1108_v36 = vld [vmem:[#allocation10 + $0x20] sm:$0xff]  ;;  %v1123_v37 = vld [vmem:[#allocation10 + $0x98] sm:$0xff]  ;;  %v1106_v39 = vld [vmem:[#allocation10 + $0x10] sm:$0xff]  ;;  %v988_v17 = vshrl.u32 %v987_v15, 7 }
 0x1d2   : > { %849 = vmatprep.subr.mxu0 %v800_v60  ;;  %1743 = vmatprep.subr.mxu1 %v1126_v55  ;;  %v1107_v12 = vld [vmem:[#allocation10 + $0x18] sm:$0xff]  ;;  %v1121_v5 = vld [vmem:[#allocation10 + $0x88] sm:$0xff]  ;;  %v1120_v40 = vld [vmem:[#allocation10 + $0x80] sm:$0xff] }
 0x1d3   : > { %850 = vmatpush1.msra.mxu0 %v799_v0  ;;  %1744 = vmatpush3.msra.mxu1 %v1110_v18  ;;  %v1104_v41 = vld [vmem:[#allocation10] sm:$0xff]  ;;  %v2645_v42 = vld [vmem:[%s2512_s17 + $0x8] sm:$0xff]  ;;  %v2648_v43 = vld [vmem:[%s2512_s17 + $0x10] sm:$0xff]  ;;  %v989_v18 = vsub.s32 0, %v988_v17 }
 0x1d4   : > { %851 = vmatprep.subr.mxu0 %v798_v3  ;;  %1745 = vmatprep.subr.mxu1 %v1125_v21  ;;  %v1385_v44 = vmul.f32 %v2645_v42, %v2645_v42  ;;  %v2653_v45 = vld [vmem:[%s2512_s17] sm:$0xff]  ;;  %v1386_v47 = vmul.f32 %v2648_v43, %v2648_v43  ;;  %v2660_v20 = vld [vmem:[%s2512_s17 + $0x50] sm:$0xff]  ;;  %v2663_v49 = vld [vmem:[%s2512_s17 + $0x18] sm:$0xff] }
 0x1d5   : > { %852 = vmatpush1.msra.mxu0 %v797_v6  ;;  %1746 = vmatpush3.msra.mxu1 %v1109_v22  ;;  %v1384_v48 = vmul.f32 %v2653_v45, %v2653_v45  ;;  %v1394_v32 = vmul.f32 %v2660_v20, %v2660_v20  ;;  %v1387_v50 = vmul.f32 %v2663_v49, %v2663_v49  ;;  %v2670_v51 = vld [vmem:[%s2512_s17 + $0x20] sm:$0xff]  ;;  %v764_v52 = vld [vmem:[#allocation2] sm:$0x3]  ;;  %v2675_v56 = vld [vmem:[%s2512_s17 + $0x28] sm:$0xff] }
 0x1d6   : > { %853 = vmatprep.subr.mxu0 %v796_v8  ;;  %1747 = vmatprep.subr.mxu1 %v1124_v35  ;;  %v1388_v54 = vmul.f32 %v2670_v51, %v2670_v51  ;;  %v765_v46 = vmul.f32 0.00390625, %v764_v52  ;;  %v766_v58 = vld [vmem:[#allocation3] sm:$0x3]  ;;  %v1389_v60 = vmul.f32 %v2675_v56, %v2675_v56  ;;  %v2680_v62 = vld [vmem:[%s2512_s17 + $0x30] sm:$0xff]  ;;  %v2690_v8 = vld [vmem:[%s2512_s17 + $0x40] sm:$0xff] }
 0x1d7   : > { %854 = vmatpush1.msra.mxu0 %v795_v10  ;;  %1748 = vmatpush3.msra.mxu1 %v1108_v36  ;;  %v767_v0 = vmul.f32 0.00390625, %v766_v58  ;;  %v1390_v3 = vmul.f32 %v2680_v62, %v2680_v62  ;;  %v2685_v4 = vld [vmem:[%s2512_s17 + $0x38] sm:$0xff]  ;;  %v1392_v10 = vmul.f32 %v2690_v8, %v2690_v8  ;;  %v2695_v11 = vld [vmem:[%s2512_s17 + $0x48] sm:$0xff] }
 0x1d8   : > { %855 = vmatprep.subr.mxu0 %v794_v53  ;;  %1749 = vmatprep.subr.mxu1 %v1123_v37  ;;  %v768_v2 = vmul.f32 %v765_v46, %v765_v46  ;;  %v1391_v7 = vmul.f32 %v2685_v4, %v2685_v4  ;;  %v1393_v53 = vmul.f32 %v2695_v11, %v2695_v11  ;;  %v774_v55 = vld [vmem:[%s2965_s2] sm:$0x3] }
 0x1d9   : > { %856 = vmatpush1.msra.mxu0 %v793_v14  ;;  %1750 = vmatpush3.msra.mxu1 %v1107_v12  ;;  %v770_v14 = vld [vmem:[%s2920_s3] sm:$0x3] }
 0x1da   : > { %890 = vmatmul.mubr.f32.vlgmr.msra.gmra.mxu0 %v777_v16  ;;  %1751 = vmatprep.subr.mxu1 %v1122_v38  ;;  %v769_v6 = vsub.f32 %v767_v0, %v768_v2 }
 0x1db   : > { %895 = vmatprep.mubr.f32.mxu0 %v2280_v30  ;;  %1752 = vmatpush3.msra.mxu1 %v1106_v39 }
 0x1dc   : > { %1753 = vmatprep.subr.mxu1 %v1121_v5  ;;  %1402 = vadd.xlane.f32.xlu0 %v1385_v44  ;;  %v771_v9 = vadd.f32 1e-05, %v769_v6 }
 0x1dd   : > { %1400 = vadd.xlane.f32.xlu1 %v1384_v48 }
 0x1de   : > { %896 = vmatmul.mubr.f32.gmra.mxu0 %v778_v19  ;;  %1976 = vrsqrt.f32 %v771_v9  ;;  %v993_v19 = vsub.s32 1, %v988_v17 }
 0x1df   : > { %901 = vmatprep.mubr.f32.mxu0 %v2280_v30 }
 0x1e0   : > { %1404 = vadd.xlane.f32.xlu0 %v1386_v47 }
 0x1e1   : > { %1420 = vadd.xlane.f32.xlu1 %v1394_v32 }
 0x1e2   : > { %902 = vmatmul.mubr.f32.gmra.mxu0 %v779_v23 }
 0x1e3   : > { %907 = vmatprep.mubr.f32.mxu0 %v2280_v30 }
 0x1e4   : > { %1406 = vadd.xlane.f32.xlu0 %v1387_v50 }
 0x1e6   : > { %908 = vmatmul.mubr.f32.gmra.mxu0 %v780_v59 }
 0x1e7   : > { %913 = vmatprep.mubr.f32.mxu0 %v2280_v30 }
 0x1e8   : > { %1408 = vadd.xlane.f32.xlu0 %v1388_v54 }
 0x1ea   : > { %914 = vmatmul.mubr.f32.gmra.mxu0 %v781_v61 }
 0x1eb   : > { %919 = vmatprep.mubr.f32.mxu0 %v2280_v30  ;;  %v1977_v13 = vpop.eup %1976 }
 0x1ec   : > { %1410 = vadd.xlane.f32.xlu0 %v1389_v60  ;;  %v773_v16 = vmul.f32 %v1977_v13, %v770_v14 }
 0x1ee   : > { %920 = vmatmul.mubr.f32.gmra.mxu0 %v782_v24  ;;  %v775_v57 = vmul.f32 %v773_v16, %v765_v46  ;;  %v2705_v22 = vrot.slane %v773_v16, %v989_v18  ;;  %v2707_v23 = vrot.slane %v773_v16, %v993_v19 }
 0x1ef   : > { %925 = vmatprep.mubr.f32.mxu0 %v2280_v30 }
 0x1f0   : > { %1412 = vadd.xlane.f32.xlu0 %v1390_v3  ;;  %v776_v21 = vsub.f32 %v774_v55, %v775_v57 }
 0x1f2   : > { %926 = vmatmul.mubr.f32.gmra.mxu0 %v783_v25  ;;  %v2709_v61 = vrot.slane %v776_v21, %v989_v18  ;;  %v2712_v25 = vrot.slane %v776_v21, %v993_v19 }
 0x1f3   : > { %931 = vmatprep.mubr.f32.mxu0 %v2280_v30 }
 0x1f4   : > { %1414 = vadd.xlane.f32.xlu0 %v1391_v7 }
 0x1f6   : > { %932 = vmatmul.mubr.f32.gmra.mxu0 %v784_v26 }
 0x1f7   : > { %937 = vmatprep.mubr.f32.mxu0 %v2280_v30 }
 0x1f8   : > { %1416 = vadd.xlane.f32.xlu0 %v1392_v10 }
 0x1fa   : > { %938 = vmatmul.mubr.f32.gmra.mxu0 %v785_v27 }
 0x1fb   : > { %943 = vmatprep.mubr.f32.mxu0 %v2280_v30 }
 0x1fc   : > { %1418 = vadd.xlane.f32.xlu0 %v1393_v53 }
 0x1fe   : > { %944 = vmatmul.mubr.f32.gmra.mxu0 %v786_v28 }
 0x1ff   : > { %949 = vmatprep.mubr.f32.mxu0 %v2280_v30 }
 0x202   : > { %950 = vmatmul.mubr.f32.gmra.mxu0 %v787_v1 }
 0x203   : > { %955 = vmatprep.mubr.f32.mxu0 %v2280_v30 }
 0x206   : > { %956 = vmatmul.mubr.f32.gmra.mxu0 %v788_v29 }
 0x207   : > { %961 = vmatprep.mubr.f32.mxu0 %v2280_v30 }
 0x20a   : > { %962 = vmatmul.mubr.f32.gmra.mxu0 %v789_v63 }
 0x20b   : > { %967 = vmatprep.mubr.f32.mxu0 %v2280_v30 }
 0x20e   : > { %968 = vmatmul.mubr.f32.gmra.mxu0 %v790_v31 }
 0x20f   : > { %973 = vmatprep.mubr.f32.mxu0 %v2280_v30 }
 0x212   : > { %974 = vmatmul.mubr.f32.gmra.mxu0 %v791_v33 }
 0x213   : > { %979 = vmatprep.mubr.f32.mxu0 %v2280_v30  ;;  %v1105_v30 = vld [vmem:[#allocation10 + $0x8] sm:$0xff] }
 0x214   : > { %1754 = vmatpush3.msra.mxu1 %v1105_v30 }
 0x215   : > { %1755 = vmatprep.subr.mxu1 %v1120_v40 }
 0x216   : > { %980 = vmatmul.mubr.f32.gmra.mxu0 %v792_v34  ;;  %1756 = vmatpush3.msra.mxu1 %v1104_v41 }
 0x29a   : > { %v891_v59 = vpop.f32.mrf.mxu0 }
 0x29b   : > { %v997_v24 = vmul.f32 %v2705_v22, %v891_v59 }
 0x29c   : > { %v893_v26 = vpop.f32.mrf.mxu0 }
 0x29d   : > { %v998_v27 = vmul.f32 %v2707_v23, %v893_v26  ;;  %v1040_v28 = vadd.f32 %v2709_v61, %v997_v24 }
 0x29e   : > { %v897_v1 = vpop.f32.mrf.mxu0 }
 0x29f   : > { %v999_v29 = vmul.f32 %v2705_v22, %v897_v1  ;;  %v1041_v63 = vadd.f32 %v2712_v25, %v998_v27  ;;  %v1072_v35 = vmax.f32 %v1040_v28, 0.0 }
 0x2a0   : > { %v899_v31 = vpop.f32.mrf.mxu0 }
 0x2a1   : > { %v1000_v33 = vmul.f32 %v2707_v23, %v899_v31  ;;  %v1073_v34 = vmax.f32 %v1041_v63, 0.0  ;;  %v1042_v36 = vadd.f32 %v2709_v61, %v999_v29 }
 0x2a2   : > { %v903_v37 = vpop.f32.mrf.mxu0 }
 0x2a3   : > { %v1043_v12 = vadd.f32 %v2712_v25, %v1000_v33  ;;  %v1001_v38 = vmul.f32 %v2705_v22, %v903_v37  ;;  %1207 = vmatprep.mubr.f32.mxu1 %v1073_v34  ;;  %v1074_v40 = vmax.f32 %v1042_v36, 0.0 }
 0x2a4   : > { %v905_v39 = vpop.f32.mrf.mxu0  ;;  %1208 = vmatmul.mubr.f32.vlgmr.msra.gmra.mxu1 %v1072_v35 }
 0x2a5   : > { %v1075_v5 = vmax.f32 %v1043_v12, 0.0  ;;  %v1002_v30 = vmul.f32 %v2707_v23, %v905_v39  ;;  %v1044_v41 = vadd.f32 %v2709_v61, %v1001_v38 }
 0x2a6   : > { %v909_v44 = vpop.f32.mrf.mxu0 }
 0x2a7   : > { %v1045_v47 = vadd.f32 %v2712_v25, %v1002_v30  ;;  %v1003_v48 = vmul.f32 %v2705_v22, %v909_v44  ;;  %1212 = vmatprep.mubr.f32.mxu1 %v1075_v5  ;;  %v1076_v46 = vmax.f32 %v1044_v41, 0.0 }
 0x2a8   : > { %v911_v32 = vpop.f32.mrf.mxu0  ;;  %1213 = vmatmul.mubr.f32.gmra.mxu1 %v1074_v40 }
 0x2a9   : > { %v1077_v50 = vmax.f32 %v1045_v47, 0.0  ;;  %v1046_v52 = vadd.f32 %v2709_v61, %v1003_v48  ;;  %v1004_v54 = vmul.f32 %v2707_v23, %v911_v32 }
 0x2aa   : > { %v915_v58 = vpop.f32.mrf.mxu0 }
 0x2ab   : > { %v1047_v60 = vadd.f32 %v2712_v25, %v1004_v54  ;;  %v1005_v0 = vmul.f32 %v2705_v22, %v915_v58  ;;  %1217 = vmatprep.mubr.f32.mxu1 %v1077_v50  ;;  %v1078_v2 = vmax.f32 %v1046_v52, 0.0 }
 0x2ac   : > { %v917_v3 = vpop.f32.mrf.mxu0  ;;  %1218 = vmatmul.mubr.f32.gmra.mxu1 %v1076_v46 }
 0x2ad   : > { %v1079_v6 = vmax.f32 %v1047_v60, 0.0  ;;  %v1048_v7 = vadd.f32 %v2709_v61, %v1005_v0  ;;  %v1006_v9 = vmul.f32 %v2707_v23, %v917_v3 }
 0x2ae   : > { %v921_v10 = vpop.f32.mrf.mxu0 }
 0x2af   : > { %v1049_v53 = vadd.f32 %v2712_v25, %v1006_v9  ;;  %v1007_v13 = vmul.f32 %v2705_v22, %v921_v10  ;;  %1222 = vmatprep.mubr.f32.mxu1 %v1079_v6  ;;  %v1080_v14 = vmax.f32 %v1048_v7, 0.0 }
 0x2b0   : > { %v923_v15 = vpop.f32.mrf.mxu0  ;;  %1223 = vmatmul.mubr.f32.gmra.mxu1 %v1078_v2 }
 0x2b1   : > { %v1081_v16 = vmax.f32 %v1049_v53, 0.0  ;;  %v1050_v17 = vadd.f32 %v2709_v61, %v1007_v13  ;;  %v1008_v57 = vmul.f32 %v2707_v23, %v923_v15 }
 0x2b2   : > { %v927_v55 = vpop.f32.mrf.mxu0 }
 0x2b3   : > { %v1051_v18 = vadd.f32 %v2712_v25, %v1008_v57  ;;  %v1009_v19 = vmul.f32 %v2705_v22, %v927_v55  ;;  %1227 = vmatprep.mubr.f32.mxu1 %v1081_v16  ;;  %v1082_v21 = vmax.f32 %v1050_v17, 0.0 }
 0x2b4   : > { %v929_v59 = vpop.f32.mrf.mxu0  ;;  %1228 = vmatmul.mubr.f32.gmra.mxu1 %v1080_v14 }
 0x2b5   : > { %v1083_v24 = vmax.f32 %v1051_v18, 0.0  ;;  %v1052_v26 = vadd.f32 %v2709_v61, %v1009_v19  ;;  %v1010_v27 = vmul.f32 %v2707_v23, %v929_v59 }
 0x2b6   : > { %v933_v28 = vpop.f32.mrf.mxu0 }
 0x2b7   : > { %v1053_v1 = vadd.f32 %v2712_v25, %v1010_v27  ;;  %v1011_v29 = vmul.f32 %v2705_v22, %v933_v28  ;;  %1232 = vmatprep.mubr.f32.mxu1 %v1083_v24  ;;  %v1084_v63 = vmax.f32 %v1052_v26, 0.0 }
 0x2b8   : > { %v935_v31 = vpop.f32.mrf.mxu0  ;;  %1233 = vmatmul.mubr.f32.gmra.mxu1 %v1082_v21 }
 0x2b9   : > { %v1085_v33 = vmax.f32 %v1053_v1, 0.0  ;;  %v1054_v34 = vadd.f32 %v2709_v61, %v1011_v29  ;;  %v1012_v35 = vmul.f32 %v2707_v23, %v935_v31 }
 0x2ba   : > { %v939_v36 = vpop.f32.mrf.mxu0 }
 0x2bb   : > { %v1055_v37 = vadd.f32 %v2712_v25, %v1012_v35  ;;  %v1013_v12 = vmul.f32 %v2705_v22, %v939_v36  ;;  %1237 = vmatprep.mubr.f32.mxu1 %v1085_v33  ;;  %v1086_v38 = vmax.f32 %v1054_v34, 0.0 }
 0x2bc   : > { %v941_v39 = vpop.f32.mrf.mxu0  ;;  %1238 = vmatmul.mubr.f32.gmra.mxu1 %v1084_v63 }
 0x2bd   : > { %v1087_v5 = vmax.f32 %v1055_v37, 0.0  ;;  %v1056_v30 = vadd.f32 %v2709_v61, %v1013_v12  ;;  %v1014_v40 = vmul.f32 %v2707_v23, %v941_v39 }
 0x2be   : > { %v945_v41 = vpop.f32.mrf.mxu0 }
 0x2bf   : > { %v1057_v44 = vadd.f32 %v2712_v25, %v1014_v40  ;;  %v1015_v47 = vmul.f32 %v2705_v22, %v945_v41  ;;  %1242 = vmatprep.mubr.f32.mxu1 %v1087_v5  ;;  %v1088_v48 = vmax.f32 %v1056_v30, 0.0 }
 0x2c0   : > { %v947_v32 = vpop.f32.mrf.mxu0  ;;  %1243 = vmatmul.mubr.f32.gmra.mxu1 %v1086_v38 }
 0x2c1   : > { %v1089_v50 = vmax.f32 %v1057_v44, 0.0  ;;  %v1058_v52 = vadd.f32 %v2709_v61, %v1015_v47  ;;  %v1016_v54 = vmul.f32 %v2707_v23, %v947_v32 }
 0x2c2   : > { %v951_v46 = vpop.f32.mrf.mxu0 }
 0x2c3   : > { %v1059_v58 = vadd.f32 %v2712_v25, %v1016_v54  ;;  %v1017_v60 = vmul.f32 %v2705_v22, %v951_v46  ;;  %1247 = vmatprep.mubr.f32.mxu1 %v1089_v50  ;;  %v1090_v0 = vmax.f32 %v1058_v52, 0.0 }
 0x2c4   : > { %v953_v2 = vpop.f32.mrf.mxu0  ;;  %1248 = vmatmul.mubr.f32.gmra.mxu1 %v1088_v48 }
 0x2c5   : > { %v1091_v3 = vmax.f32 %v1059_v58, 0.0  ;;  %v1060_v6 = vadd.f32 %v2709_v61, %v1017_v60  ;;  %v1018_v7 = vmul.f32 %v2707_v23, %v953_v2  ;;  %v2781_v60 = vld [vmem:[%s2512_s17 + $0x60] sm:$0xff] }
 0x2c6   : > { %v957_v9 = vpop.f32.mrf.mxu0 }
 0x2c7   : > { %v1061_v10 = vadd.f32 %v2712_v25, %v1018_v7  ;;  %v1019_v53 = vmul.f32 %v2705_v22, %v957_v9  ;;  %1252 = vmatprep.mubr.f32.mxu1 %v1091_v3  ;;  %v1092_v13 = vmax.f32 %v1060_v6, 0.0  ;;  %v2800_v7 = vld [vmem:[%s2966_s27] ss:$0 sm:$0xff] }
 0x2c8   : > { %v959_v14 = vpop.f32.mrf.mxu0  ;;  %1253 = vmatmul.mubr.f32.gmra.mxu1 %v1090_v0 }
 0x2c9   : > { %v1093_v15 = vmax.f32 %v1061_v10, 0.0  ;;  %v1062_v16 = vadd.f32 %v2709_v61, %v1019_v53  ;;  %v1020_v17 = vmul.f32 %v2707_v23, %v959_v14 }
 0x2ca   : > { %v963_v57 = vpop.f32.mrf.mxu0 }
 0x2cb   : > { %v1063_v55 = vadd.f32 %v2712_v25, %v1020_v17  ;;  %v1021_v18 = vmul.f32 %v2705_v22, %v963_v57  ;;  %1257 = vmatprep.mubr.f32.mxu1 %v1093_v15  ;;  %v1094_v19 = vmax.f32 %v1062_v16, 0.0 }
 0x2cc   : > { %v965_v21 = vpop.f32.mrf.mxu0  ;;  %1258 = vmatmul.mubr.f32.gmra.mxu1 %v1092_v13 }
 0x2cd   : > { %v1095_v59 = vmax.f32 %v1063_v55, 0.0  ;;  %v1064_v24 = vadd.f32 %v2709_v61, %v1021_v18  ;;  %v1022_v26 = vmul.f32 %v2707_v23, %v965_v21 }
 0x2ce   : > { %v969_v27 = vpop.f32.mrf.mxu0 }
 0x2cf   : > { %v1065_v28 = vadd.f32 %v2712_v25, %v1022_v26  ;;  %v1023_v1 = vmul.f32 %v2705_v22, %v969_v27  ;;  %1262 = vmatprep.mubr.f32.mxu1 %v1095_v59  ;;  %v1096_v29 = vmax.f32 %v1064_v24, 0.0 }
 0x2d0   : > { %v971_v63 = vpop.f32.mrf.mxu0  ;;  %1263 = vmatmul.mubr.f32.gmra.mxu1 %v1094_v19 }
 0x2d1   : > { %v1097_v31 = vmax.f32 %v1065_v28, 0.0  ;;  %v1066_v33 = vadd.f32 %v2709_v61, %v1023_v1  ;;  %v1024_v34 = vmul.f32 %v2707_v23, %v971_v63 }
 0x2d2   : > { %v975_v35 = vpop.f32.mrf.mxu0 }
 0x2d3   : > { %v1067_v36 = vadd.f32 %v2712_v25, %v1024_v34  ;;  %v1025_v37 = vmul.f32 %v2705_v22, %v975_v35  ;;  %1267 = vmatprep.mubr.f32.mxu1 %v1097_v31  ;;  %v1098_v12 = vmax.f32 %v1066_v33, 0.0 }
 0x2d4   : > { %v977_v38 = vpop.f32.mrf.mxu0  ;;  %1268 = vmatmul.mubr.f32.gmra.mxu1 %v1096_v29 }
 0x2d5   : > { %v1099_v39 = vmax.f32 %v1067_v36, 0.0  ;;  %v1068_v5 = vadd.f32 %v2709_v61, %v1025_v37  ;;  %v1026_v30 = vmul.f32 %v2707_v23, %v977_v38 }
 0x2d6   : > { %v981_v40 = vpop.f32.mrf.mxu0 }
 0x2d7   : > { %v1069_v41 = vadd.f32 %v2712_v25, %v1026_v30  ;;  %v1027_v44 = vmul.f32 %v2705_v22, %v981_v40  ;;  %1272 = vmatprep.mubr.f32.mxu1 %v1099_v39  ;;  %v1100_v47 = vmax.f32 %v1068_v5, 0.0  ;;  %v2778_v22 = vld [vmem:[%s2512_s17 + $0x58] sm:$0xff] }
 0x2d8   : > { %v983_v48 = vpop.f32.mrf.mxu0  ;;  %1273 = vmatmul.mubr.f32.gmra.mxu1 %v1098_v12  ;;  %v1395_v0 = vmul.f32 %v2778_v22, %v2778_v22 }
 0x2d9   : > { %v1101_v32 = vmax.f32 %v1069_v41, 0.0  ;;  %v1070_v50 = vadd.f32 %v2709_v61, %v1027_v44  ;;  %v1028_v52 = vmul.f32 %v2707_v23, %v983_v48  ;;  %v1396_v61 = vmul.f32 %v2781_v60, %v2781_v60  ;;  %v2788_v23 = vld [vmem:[%s2512_s17 + $0x68] sm:$0xff] }
 0x2da   : > { %1422 = vadd.xlane.f32.xlu0 %v1395_v0  ;;  %v1397_v2 = vmul.f32 %v2788_v23, %v2788_v23 }
 0x2db   : > { %v1071_v54 = vadd.f32 %v2712_v25, %v1028_v52  ;;  %1277 = vmatprep.mubr.f32.mxu1 %v1101_v32  ;;  %v1102_v46 = vmax.f32 %v1070_v50, 0.0  ;;  %1424 = vadd.xlane.f32.xlu1 %v1396_v61  ;;  %v2791_v25 = vld [vmem:[%s2512_s17 + $0x70] sm:$0xff] }
 0x2dc   : > { %1278 = vmatmul.mubr.f32.gmra.mxu1 %v1100_v47  ;;  %v1398_v3 = vmul.f32 %v2791_v25, %v2791_v25 }
 0x2dd   : > { %v1103_v58 = vmax.f32 %v1071_v54, 0.0 }
 0x2de   : > { %1426 = vadd.xlane.f32.xlu0 %v1397_v2 }
 0x2df   : > { %1282 = vmatprep.mubr.f32.mxu1 %v1103_v58  ;;  %1428 = vadd.xlane.f32.xlu1 %v1398_v3 }
 0x2e0   : > { %1283 = vmatmul.mubr.f32.gmra.mxu1 %v1102_v46 }
 0x364   : > { %v1757_v6 = vpop.f32.mrf.mxu1 }
 0x366   : > { %v1758_v9 = vpop.f32.mrf.mxu1 }
 0x367   : > { %v1759_v10 = vadd.f32 %v1758_v9, %v1757_v6 }
 0x368   : > { %v1760_v53 = vpop.f32.mrf.mxu1 }
 0x369   : > { %v1210_v13 = vadd.f32 %v1759_v10, %v2800_v7 }
 0x36a   : > { %v1761_v14 = vpop.f32.mrf.mxu1 }
 0x36b   : > { %v1762_v15 = vadd.f32 %v1761_v14, %v1760_v53  ;;  %v1464_v16 = vmul.f32 %v2653_v45, %v1210_v13  ;;  %v1304_v17 = vmul.f32 %v1210_v13, %v1210_v13 }
 0x36c   : > { %v1763_v57 = vpop.f32.mrf.mxu1 }
 0x36d   : > { %v1215_v55 = vadd.f32 %v1762_v15, %v2800_v7  ;;  %1480 = vadd.xlane.f32.xlu1 %v1464_v16  ;;  %1320 = vadd.xlane.f32.xlu0 %v1304_v17 }
 0x36e   : > { %v1764_v18 = vpop.f32.mrf.mxu1 }
 0x36f   : > { %v1765_v19 = vadd.f32 %v1764_v18, %v1763_v57  ;;  %v1305_v21 = vmul.f32 %v1215_v55, %v1215_v55  ;;  %v1465_v1 = vmul.f32 %v2645_v42, %v1215_v55 }
 0x370   : > { %v1766_v59 = vpop.f32.mrf.mxu1 }
 0x371   : > { %v1220_v24 = vadd.f32 %v1765_v19, %v2800_v7  ;;  %1322 = vadd.xlane.f32.xlu0 %v1305_v21 }
 0x372   : > { %v1767_v26 = vpop.f32.mrf.mxu1 }
 0x373   : > { %v1768_v27 = vadd.f32 %v1767_v26, %v1766_v59  ;;  %v1306_v28 = vmul.f32 %v1220_v24, %v1220_v24  ;;  %v1466_v33 = vmul.f32 %v2648_v43, %v1220_v24 }
 0x374   : > { %v1769_v29 = vpop.f32.mrf.mxu1 }
 0x375   : > { %v1225_v45 = vadd.f32 %v1768_v27, %v2800_v7  ;;  %1324 = vadd.xlane.f32.xlu1 %v1306_v28  ;;  %1482 = vadd.xlane.f32.xlu0 %v1465_v1 }
 0x376   : > { %v1770_v63 = vpop.f32.mrf.mxu1 }
 0x377   : > { %v1771_v31 = vadd.f32 %v1770_v63, %v1769_v29  ;;  %v1467_v34 = vmul.f32 %v2663_v49, %v1225_v45  ;;  %v1307_v38 = vmul.f32 %v1225_v45, %v1225_v45 }
 0x378   : > { %v1772_v35 = vpop.f32.mrf.mxu1 }
 0x379   : > { %1484 = vadd.xlane.f32.xlu1 %v1466_v33  ;;  %1486 = vadd.xlane.f32.xlu0 %v1467_v34  ;;  %v1230_v37 = vadd.f32 %v1771_v31, %v2800_v7 }
 0x37a   : > { %v1773_v36 = vpop.f32.mrf.mxu1 }
 0x37b   : > { %v1774_v12 = vadd.f32 %v1773_v36, %v1772_v35  ;;  %v1308_v30 = vmul.f32 %v1230_v37, %v1230_v37  ;;  %v1468_v47 = vmul.f32 %v2670_v51, %v1230_v37 }
 0x37c   : > { %v1775_v42 = vpop.f32.mrf.mxu1 }
 0x37d   : > { %v1235_v39 = vadd.f32 %v1774_v12, %v2800_v7  ;;  %1326 = vadd.xlane.f32.xlu1 %v1307_v38 }
 0x37e   : > { %v1776_v5 = vpop.f32.mrf.mxu1 }
 0x37f   : > { %v1469_v40 = vmul.f32 %v2675_v56, %v1235_v39  ;;  %v1777_v49 = vadd.f32 %v1776_v5, %v1775_v42  ;;  %v1309_v54 = vmul.f32 %v1235_v39, %v1235_v39  ;;  %v1303_v39 = vld [vmem:[%s2512_s17 + $0x78] sm:$0xff] }
 0x380   : > { %v1778_v41 = vpop.f32.mrf.mxu1  ;;  %v1399_v5 = vmul.f32 %v1303_v39, %v1303_v39 }
 0x381   : > { %1328 = vadd.xlane.f32.xlu1 %v1308_v30  ;;  %1490 = vadd.xlane.f32.xlu0 %v1469_v40  ;;  %v1240_v52 = vadd.f32 %v1777_v49, %v2800_v7 }
 0x382   : > { %v1779_v43 = vpop.f32.mrf.mxu1 }
 0x383   : > { %v1780_v44 = vadd.f32 %v1779_v43, %v1778_v41  ;;  %v1310_v0 = vmul.f32 %v1240_v52, %v1240_v52  ;;  %v1470_v51 = vmul.f32 %v2680_v62, %v1240_v52 }
 0x384   : > { %v1781_v48 = vpop.f32.mrf.mxu1 }
 0x385   : > { %v1245_v32 = vadd.f32 %v1780_v44, %v2800_v7  ;;  %1488 = vadd.xlane.f32.xlu1 %v1468_v47  ;;  %v1403_v47 = vpop.xlane.xlu0 %1402 }
 0x386   : > { %v1782_v50 = vpop.f32.mrf.mxu1 }
 0x387   : > { %v1471_v46 = vmul.f32 %v2685_v4, %v1245_v32  ;;  %v1783_v3 = vadd.f32 %v1782_v50, %v1781_v48  ;;  %v1311_v14 = vmul.f32 %v1245_v32, %v1245_v32  ;;  %v1401_v50 = vpop.xlane.xlu1 %1400 }
 0x388   : > { %v1784_v58 = vpop.f32.mrf.mxu1 }
 0x389   : > { %1330 = vadd.xlane.f32.xlu1 %v1309_v54  ;;  %1494 = vadd.xlane.f32.xlu0 %v1471_v46  ;;  %v1250_v10 = vadd.f32 %v1783_v3, %v2800_v7 }
 0x38a   : > { %v1785_v56 = vpop.f32.mrf.mxu1 }
 0x38b   : > { %v1786_v53 = vadd.f32 %v1785_v56, %v1784_v58  ;;  %v1312_v55 = vmul.f32 %v1250_v10, %v1250_v10  ;;  %v1472_v30 = vmul.f32 %v2690_v8, %v1250_v10 }
 0x38c   : > { %v1787_v61 = vpop.f32.mrf.mxu1 }
 0x38d   : > { %1332 = vadd.xlane.f32.xlu1 %v1310_v0  ;;  %v1255_v17 = vadd.f32 %v1786_v53, %v2800_v7 }
 0x38e   : > { %v1788_v2 = vpop.f32.mrf.mxu1 }
 0x38f   : > { %v1789_v57 = vadd.f32 %v1788_v2, %v1787_v61  ;;  %v1313_v26 = vmul.f32 %v1255_v17, %v1255_v17  ;;  %v1473_v40 = vmul.f32 %v2695_v11, %v1255_v17  ;;  %v1405_v11 = vpop.xlane.xlu0 %1404  ;;  %v1432_v17 = vmax.f32 %v1401_v50, 1e-24 }
 0x390   : > { %v1790_v6 = vpop.f32.mrf.mxu1 }
 0x391   : > { %1492 = vadd.xlane.f32.xlu1 %v1470_v51  ;;  %v1260_v21 = vadd.f32 %v1789_v57, %v2800_v7 }
 0x392   : > { %v1791_v9 = vpop.f32.mrf.mxu1 }
 0x393   : > { %v1792_v13 = vadd.f32 %v1791_v9, %v1790_v6  ;;  %v1314_v63 = vmul.f32 %v1260_v21, %v1260_v21  ;;  %v1474_v41 = vmul.f32 %v2660_v20, %v1260_v21  ;;  %v1407_v48 = vpop.xlane.xlu0 %1406 }
 0x394   : > { %v1793_v4 = vpop.f32.mrf.mxu1  ;;  %v1435_v21 = vmax.f32 %v1407_v48, 1e-24 }
 0x395   : > { %v1265_v15 = vadd.f32 %v1792_v13, %v2800_v7  ;;  %1334 = vadd.xlane.f32.xlu1 %v1311_v14 }
 0x396   : > { %v1794_v16 = vpop.f32.mrf.mxu1 }
 0x397   : > { %v1315_v18 = vmul.f32 %v1265_v15, %v1265_v15  ;;  %v1795_v59 = vadd.f32 %v1794_v16, %v1793_v4  ;;  %v1475_v43 = vmul.f32 %v2778_v22, %v1265_v15  ;;  %v1409_v20 = vpop.xlane.xlu0 %1408  ;;  %v2834_v22 = vpop.xlane.xlu1 %1420  ;;  %v1433_v15 = vmax.f32 %v1403_v47, 1e-24 }
 0x398   : > { %v1796_v19 = vpop.f32.mrf.mxu1 }
 0x399   : > { %1336 = vadd.xlane.f32.xlu1 %v1312_v55  ;;  %1342 = vadd.xlane.f32.xlu0 %v1315_v18  ;;  %v1270_v29 = vadd.f32 %v1795_v59, %v2800_v7 }
 0x39a   : > { %v1797_v62 = vpop.f32.mrf.mxu1 }
 0x39b   : > { %v1798_v24 = vadd.f32 %v1797_v62, %v1796_v19  ;;  %v1316_v37 = vmul.f32 %v1270_v29, %v1270_v29  ;;  %v1411_v32 = vpop.xlane.xlu0 %1410  ;;  %v2838_v54 = vpop.xlane.xlu1 %1424  ;;  %v1434_v19 = vmax.f32 %v1405_v11, 1e-24 }
 0x39c   : > { %v1799_v27 = vpop.f32.mrf.mxu1 }
 0x39d   : > { %v1275_v28 = vadd.f32 %v1798_v24, %v2800_v7  ;;  %1338 = vadd.xlane.f32.xlu1 %v1313_v26  ;;  %v1436_v26 = vmax.f32 %v1409_v20, 1e-24 }
 0x39e   : > { %v1800_v1 = vpop.f32.mrf.mxu1 }
 0x39f   : > { %v1801_v45 = vadd.f32 %v1800_v1, %v1799_v27  ;;  %v1317_v31 = vmul.f32 %v1275_v28, %v1275_v28  ;;  %v1477_v49 = vmul.f32 %v2788_v23, %v1275_v28  ;;  %v1413_v52 = vpop.xlane.xlu0 %1412  ;;  %v1437_v1 = vmax.f32 %v1411_v32, 1e-24 }
 0x3a0   : > { %v1802_v33 = vpop.f32.mrf.mxu1 }
 0x3a1   : > { %1340 = vadd.xlane.f32.xlu1 %v1314_v63  ;;  %1346 = vadd.xlane.f32.xlu0 %v1317_v31  ;;  %v1280_v35 = vadd.f32 %v1801_v45, %v2800_v7  ;;  %v1438_v45 = vmax.f32 %v1413_v52, 1e-24 }
 0x3a2   : > { %v1803_v34 = vpop.f32.mrf.mxu1 }
 0x3a3   : > { %v1804_v36 = vadd.f32 %v1803_v34, %v1802_v33  ;;  %v1318_v38 = vmul.f32 %v1280_v35, %v1280_v35  ;;  %v1478_v44 = vmul.f32 %v2791_v25, %v1280_v35  ;;  %v2842_v25 = vpop.xlane.xlu1 %1428  ;;  %v1442_v33 = vmax.f32 %v2834_v22, 1e-24 }
 0x3a5   : > { %v1285_v12 = vadd.f32 %v1804_v36, %v2800_v7  ;;  %1344 = vadd.xlane.f32.xlu1 %v1316_v37  ;;  %v1476_v7 = vmul.f32 %v2781_v60, %v1270_v29  ;;  %v2836_v60 = vpop.xlane.xlu0 %1414 }
 0x3a6   : > { %v1439_v36 = vmax.f32 %v2836_v60, 1e-24 }
 0x3a7   : > { %v1319_v42 = vmul.f32 %v1285_v12, %v1285_v12  ;;  %v1479_v8 = vmul.f32 %v1303_v39, %v1285_v12 }
 0x3a9   : > { %1348 = vadd.xlane.f32.xlu1 %v1318_v38  ;;  %1350 = vadd.xlane.f32.xlu0 %v1319_v42  ;;  %v2840_v23 = vpop.xlane.xlu0 %1416 }
 0x3aa   : > { %v1440_v12 = vmax.f32 %v2840_v23, 1e-24 }
 0x3ad   : > { %1430 = vadd.xlane.f32.xlu1 %v1399_v5  ;;  %1496 = vadd.xlane.f32.xlu0 %v1472_v30  ;;  %v2844_v46 = vpop.xlane.xlu0 %1418 }
 0x3b1   : > { %1498 = vadd.xlane.f32.xlu1 %v1473_v40  ;;  %1500 = vadd.xlane.f32.xlu0 %v1474_v41  ;;  %v2846_v56 = vpop.xlane.xlu0 %1422  ;;  %v1441_v40 = vmax.f32 %v2844_v46, 1e-24 }
 0x3b2   : > { %v1443_v50 = vmax.f32 %v2846_v56, 1e-24  ;;  %v1444_v56 = vmax.f32 %v2838_v54, 1e-24 }
 0x3b5   : > { %1502 = vadd.xlane.f32.xlu1 %v1475_v43  ;;  %1504 = vadd.xlane.f32.xlu0 %v1476_v7  ;;  %v2848_v61 = vpop.xlane.xlu0 %1426 }
 0x3b6   : > { %v1445_v54 = vmax.f32 %v2848_v61, 1e-24 }
 0x3b9   : > { %1506 = vadd.xlane.f32.xlu1 %v1477_v49  ;;  %1508 = vadd.xlane.f32.xlu0 %v1478_v44 }
 0x3bd   : > { %1510 = vadd.xlane.f32.xlu1 %v1479_v8 }
 0x3f6   : > { %v1481_v58 = vpop.xlane.xlu1 %1480  ;;  %v1321_v51 = vpop.xlane.xlu0 %1320 }
 0x3f7   : > { %v1352_v13 = vmax.f32 %v1321_v51, 1e-24 }
 0x3fa   : > { %v1323_v9 = vpop.xlane.xlu0 %1322 }
 0x3fb   : > { %v1353_v53 = vmax.f32 %v1323_v9, 1e-24 }
 0x3fd   : > { %1978 = vrsqrt.f32 %v1353_v53 }
 0x3fe   : > { %v1325_v0 = vpop.xlane.xlu1 %1324  ;;  %1980 = vrsqrt.f32 %v1352_v13  ;;  %v1483_v55 = vpop.xlane.xlu0 %1482 }
 0x3ff   : > { %v1354_v4 = vmax.f32 %v1325_v0, 1e-24 }
 0x401   : > { %1982 = vrsqrt.f32 %v1354_v4 }
 0x402   : > { %v1485_v2 = vpop.xlane.xlu1 %1484  ;;  %1984 = vrsqrt.f32 %v1433_v15  ;;  %v1487_v27 = vpop.xlane.xlu0 %1486 }
 0x406   : > { %v1327_v3 = vpop.xlane.xlu1 %1326 }
 0x407   : > { %v1355_v16 = vmax.f32 %v1327_v3, 1e-24 }
 0x409   : > { %1986 = vrsqrt.f32 %v1355_v16 }
 0x40a   : > { %v1329_v6 = vpop.xlane.xlu1 %1328  ;;  %1988 = vrsqrt.f32 %v1432_v17  ;;  %v1491_v63 = vpop.xlane.xlu0 %1490 }
 0x40b   : > { %v1356_v18 = vmax.f32 %v1329_v6, 1e-24  ;;  %v1979_v31 = vpop.eup %1978 }
 0x40c   : > { %v1981_v35 = vpop.eup %1980  ;;  %v1514_v42 = vmul.f32 %v1979_v31, %v1483_v55 }
 0x40d   : > { %1990 = vrsqrt.f32 %v1356_v18  ;;  %v1513_v41 = vmul.f32 %v1981_v35, %v1481_v58 }
 0x40e   : > { %v2850_v10 = vpop.xlane.xlu1 %1488  ;;  %1992 = vrsqrt.f32 %v1434_v19  ;;  %v1983_v37 = vpop.eup %1982 }
 0x40f   : > { %v1985_v38 = vpop.eup %1984  ;;  %v1515_v49 = vmul.f32 %v1983_v37, %v1485_v2 }
 0x410   : > { %v1530_v11 = vmul.f32 %v1985_v38, %v1514_v42 }
 0x412   : > { %v1331_v14 = vpop.xlane.xlu1 %1330  ;;  %v1495_v39 = vpop.xlane.xlu0 %1494  ;;  %v1547_v51 = vsel %vm1545_vm2, %v1530_v11, 0.0 }
 0x413   : > { %v1357_v62 = vmax.f32 %v1331_v14, 1e-24 }
 0x415   : > { %1994 = vrsqrt.f32 %v1357_v62 }
 0x416   : > { %v1333_v57 = vpop.xlane.xlu1 %1332  ;;  %1996 = vrsqrt.f32 %v1435_v21  ;;  %v1987_v30 = vpop.eup %1986 }
 0x417   : > { %v1358_v24 = vmax.f32 %v1333_v57, 1e-24  ;;  %v1989_v7 = vpop.eup %1988  ;;  %v1516_v48 = vmul.f32 %v1987_v30, %v1487_v27 }
 0x418   : > { %v1529_v52 = vmul.f32 %v1989_v7, %v1513_v41 }
 0x419   : > { %1998 = vrsqrt.f32 %v1358_v24 }
 0x41a   : > { %v2852_v59 = vpop.xlane.xlu1 %1492  ;;  %2000 = vrsqrt.f32 %v1436_v26  ;;  %v1991_v44 = vpop.eup %1990  ;;  %v1546_v14 = vsel %vm1545_vm2, %v1529_v52, 0.0 }
 0x41b   : > { %v1993_v47 = vpop.eup %1992  ;;  %v1517_v46 = vmul.f32 %v1991_v44, %v2850_v10  ;;  %v1548_v55 = vadd.f32 %v1547_v51, %v1546_v14 }
 0x41c   : > { %v1531_v23 = vmul.f32 %v1993_v47, %v1515_v49 }
 0x41e   : > { %v1335_v28 = vpop.xlane.xlu1 %1334  ;;  %v1549_v10 = vsel %vm1545_vm2, %v1531_v23, 0.0 }
 0x41f   : > { %v1359_v29 = vmax.f32 %v1335_v28, 1e-24  ;;  %v1550_v26 = vadd.f32 %v1549_v10, %v1548_v55 }
 0x421   : > { %2002 = vrsqrt.f32 %v1359_v29 }
 0x422   : > { %v1337_v34 = vpop.xlane.xlu1 %1336  ;;  %2004 = vrsqrt.f32 %v1437_v1  ;;  %v1343_v20 = vpop.xlane.xlu0 %1342 }
 0x423   : > { %2006 = vrsqrt.f32 %v1438_v45  ;;  %v1360_v5 = vmax.f32 %v1337_v34, 1e-24  ;;  %v1995_v32 = vpop.eup %1994  ;;  %v1363_v2 = vmax.f32 %v1343_v20, 1e-24 }
 0x424   : > { %2008 = vrsqrt.f32 %v1442_v33  ;;  %v1997_v60 = vpop.eup %1996  ;;  %v1518_v9 = vmul.f32 %v1995_v32, %v1491_v63 }
 0x425   : > { %2010 = vrsqrt.f32 %v1439_v36  ;;  %v1532_v6 = vmul.f32 %v1997_v60, %v1516_v48 }
 0x426   : > { %v1339_v43 = vpop.xlane.xlu1 %1338  ;;  %2012 = vrsqrt.f32 %v1440_v12  ;;  %v1999_v0 = vpop.eup %1998 }
 0x427   : > { %v1361_v8 = vmax.f32 %v1339_v43, 1e-24  ;;  %2014 = vrsqrt.f32 %v1360_v5  ;;  %v2001_v3 = vpop.eup %2000  ;;  %v1519_v16 = vmul.f32 %v1999_v0, %v2852_v59  ;;  %v1551_v19 = vsel %vm1545_vm2, %v1532_v6, 0.0 }
 0x428   : > { %2016 = vrsqrt.f32 %v1441_v40  ;;  %v1533_v15 = vmul.f32 %v2001_v3, %v1517_v46  ;;  %v1446_v59 = vmax.f32 %v2842_v25, 1e-24  ;;  %v1552_v33 = vadd.f32 %v1551_v19, %v1550_v26 }
 0x429   : > { %2018 = vrsqrt.f32 %v1361_v8 }
 0x42a   : > { %v1341_v22 = vpop.xlane.xlu1 %1340  ;;  %v1347_v53 = vpop.xlane.xlu0 %1346  ;;  %v1553_v29 = vsel %vm1545_vm2, %v1533_v15, 0.0 }
 0x42b   : > { %v1362_v58 = vmax.f32 %v1341_v22, 1e-24  ;;  %v1365_v18 = vmax.f32 %v1347_v53, 1e-24  ;;  %v1554_v12 = vadd.f32 %v1553_v29, %v1552_v33 }
 0x42d   : > { %2020 = vrsqrt.f32 %v1362_v58 }
 0x42e   : > { %v2003_v13 = vpop.eup %2002  ;;  %2022 = vrsqrt.f32 %v1443_v50  ;;  %v1345_v4 = vpop.xlane.xlu1 %1344 }
 0x42f   : > { %v1364_v17 = vmax.f32 %v1345_v4, 1e-24  ;;  %v2005_v57 = vpop.eup %2004  ;;  %2024 = vrsqrt.f32 %v1363_v2  ;;  %v1520_v21 = vmul.f32 %v2003_v13, %v1495_v39 }
 0x430   : > { %v1534_v62 = vmul.f32 %v2005_v57, %v1518_v9  ;;  %v2007_v24 = vpop.eup %2006 }
 0x431   : > { %2026 = vrsqrt.f32 %v1364_v17  ;;  %v2009_v1 = vpop.eup %2008  ;;  %v1535_v45 = vmul.f32 %v2007_v24, %v1519_v16 }
 0x432   : > { %2028 = vrsqrt.f32 %v1444_v56  ;;  %v1349_v27 = vpop.xlane.xlu1 %1348  ;;  %v1351_v28 = vpop.xlane.xlu0 %1350  ;;  %v1555_v35 = vsel %vm1545_vm2, %v1534_v62, 0.0 }
 0x433   : > { %v1366_v63 = vmax.f32 %v1349_v27, 1e-24  ;;  %v2011_v31 = vpop.eup %2010  ;;  %2030 = vrsqrt.f32 %v1365_v18  ;;  %v1367_v36 = vmax.f32 %v1351_v28, 1e-24  ;;  %v1557_v25 = vsel %vm1545_vm2, %v1535_v45, 0.0 }
 0x434   : > { %v2013_v34 = vpop.eup %2012  ;;  %v1536_v37 = vmul.f32 %v2011_v31, %v1520_v21  ;;  %v1556_v40 = vadd.f32 %v1555_v35, %v1554_v12 }
 0x435   : > { %2032 = vrsqrt.f32 %v1366_v63  ;;  %v2015_v61 = vpop.eup %2014 }
 0x436   : > { %2034 = vrsqrt.f32 %v1445_v54  ;;  %v1431_v38 = vpop.xlane.xlu1 %1430  ;;  %v1497_v42 = vpop.xlane.xlu0 %1496  ;;  %v1559_v43 = vsel %vm1545_vm2, %v1536_v37, 0.0  ;;  %v1558_v44 = vadd.f32 %v1557_v25, %v1556_v40 }
 0x437   : > { %v2017_v39 = vpop.eup %2016  ;;  %2036 = vrsqrt.f32 %v1446_v59  ;;  %v1447_v5 = vmax.f32 %v1431_v38, 1e-24  ;;  %v1521_v30 = vmul.f32 %v2015_v61, %v1497_v42 }
 0x438   : > { %v2019_v41 = vpop.eup %2018  ;;  %2038 = vrsqrt.f32 %v1367_v36  ;;  %v1560_v50 = vadd.f32 %v1559_v43, %v1558_v44 }
 0x439   : > { %v1537_v7 = vmul.f32 %v2013_v34, %v1521_v30  ;;  %2040 = vrsqrt.f32 %v1447_v5 }
 0x43a   : > { %v2021_v49 = vpop.eup %2020  ;;  %v1499_v8 = vpop.xlane.xlu1 %1498 }
 0x43b   : > { %v1501_v47 = vpop.xlane.xlu0 %1500  ;;  %v2023_v11 = vpop.eup %2022  ;;  %v1561_v48 = vsel %vm1545_vm2, %v1537_v7, 0.0  ;;  %v1522_v20 = vmul.f32 %v2019_v41, %v1499_v8 }
 0x43c   : > { %v1523_v32 = vmul.f32 %v2021_v49, %v1501_v47  ;;  %v2025_v52 = vpop.eup %2024  ;;  %v1562_v46 = vadd.f32 %v1561_v48, %v1560_v50 }
 0x43d   : > { %v1538_v22 = vmul.f32 %v2017_v39, %v1522_v20 }
 0x43e   : > { %v1539_v60 = vmul.f32 %v2009_v1, %v1523_v32  ;;  %v2027_v23 = vpop.eup %2026  ;;  %v1503_v58 = vpop.xlane.xlu1 %1502 }
 0x43f   : > { %v1505_v0 = vpop.xlane.xlu0 %1504  ;;  %v2029_v2 = vpop.eup %2028  ;;  %v1563_v3 = vsel %vm1545_vm2, %v1538_v22, 0.0  ;;  %v1524_v51 = vmul.f32 %v2025_v52, %v1503_v58 }
 0x440   : > { %v1525_v6 = vmul.f32 %v2027_v23, %v1505_v0  ;;  %v1564_v9 = vadd.f32 %v1563_v3, %v1562_v46  ;;  %v2031_v53 = vpop.eup %2030  ;;  %v1565_v13 = vsel %vm1545_vm2, %v1539_v60, 0.0 }
 0x441   : > { %v1540_v56 = vmul.f32 %v2023_v11, %v1524_v51 }
 0x442   : > { %v1541_v14 = vmul.f32 %v2029_v2, %v1525_v6  ;;  %v2033_v4 = vpop.eup %2032  ;;  %v1566_v10 = vadd.f32 %v1565_v13, %v1564_v9  ;;  %v1507_v15 = vpop.xlane.xlu1 %1506 }
 0x443   : > { %v1509_v16 = vpop.xlane.xlu0 %1508  ;;  %v2035_v17 = vpop.eup %2034  ;;  %v1567_v57 = vsel %vm1545_vm2, %v1540_v56, 0.0  ;;  %v1526_v55 = vmul.f32 %v2031_v53, %v1507_v15 }
 0x444   : > { %v1527_v18 = vmul.f32 %v2033_v4, %v1509_v16  ;;  %v2037_v19 = vpop.eup %2036  ;;  %v1568_v62 = vadd.f32 %v1567_v57, %v1566_v10  ;;  %v1569_v21 = vsel %vm1545_vm2, %v1541_v14, 0.0 }
 0x445   : > { %v1542_v24 = vmul.f32 %v2035_v17, %v1526_v55  ;;  %v2039_v26 = vpop.eup %2038 }
 0x446   : > { %v1543_v54 = vmul.f32 %v2037_v19, %v1527_v18  ;;  %v1570_v27 = vadd.f32 %v1569_v21, %v1568_v62  ;;  %v1511_v28 = vpop.xlane.xlu1 %1510  ;;  %v2041_v29 = vpop.eup %2040 }
 0x447   : > { %v1571_v1 = vsel %vm1545_vm2, %v1542_v24, 0.0  ;;  %v1528_v59 = vmul.f32 %v2039_v26, %v1511_v28 }
 0x448   : > { %v1572_v45 = vadd.f32 %v1571_v1, %v1570_v27  ;;  %v1573_v31 = vsel %vm1545_vm2, %v1543_v54, 0.0 }
 0x449   : > { %v1544_v63 = vmul.f32 %v2041_v29, %v1528_v59 }
 0x44a   : > { %v1574_v33 = vadd.f32 %v1573_v31, %v1572_v45 }
 0x44b   : > { %v1575_v34 = vsel %vm1545_vm2, %v1544_v63, 0.0 }
 0x44c   : > { %v1576_v35 = vadd.f32 %v1575_v34, %v1574_v33 }
 0x44e   : > { %1577 = vadd.xlane.f32.xlu0 %v1576_v35 }
 0x4d7   : > { %v1578_v36 = vpop.xlane.xlu0 %1577 }
 0x4d8   : > { %v1579_v37 = vrot.slane %v1578_v36, 4 }
 0x4da   : > { %v1580_v61 = vadd.f32 %v1579_v37, %v1578_v36 }
 0x4dc   : > { %v1581_v12 = vrot.slane %v1580_v61, 2 }
 0x4de   : > { %v1582_v38 = vadd.f32 %v1581_v12, %v1580_v61 }
 0x4e0   : > { %v1583_v42 = vrot.slane %v1582_v38, 1 }
 0x4e2   : > { %v1584_v39 = vadd.f32 %v1583_v42, %v1582_v38 }
 0x4e4   : > { %1837 = vpush %v1584_v39 }
 0x515   : > { %s1838_s22 = spop %1837 }
 0x516   : > { %s1586_s16 = smul.f32 -0.0078125, %s1838_s22 }
 0x518   : > { %s1587_s0 = sadd.f32 %s1586_s16, %s1512_s6 }
 0x51a   : > { %1589 = sst [smem:[#allocation12]] %s1587_s0 }
 0x51b PF: > { %p1874_p9 = scmp.eq.s32.totalorder %s2374_s12, 3  ;;  %s2281_s20 = smov [#allocation12]  }
 0x51c   : > { %s2967_s19 = sld [smem:[#allocation28_spill]] }
 0x522   : > { %1852 = dma.smem_to_hbm (%p1874_p9), %s2281_s20, 16, %s2967_s19, [#allocation6]  }
 0x523   : > { %2221 = dma.done.wait (%p1874_p9), [#allocation6], 16  }
 0x524   : > { %2223 = vsyncadd (%p1874_p9), [#allocation6], 4294967280 }
 0x525   : > { %1603 = sfence }
 0x526 PF: > { %s25_s11 = sadd.s32 1, %s2266_s11   ;;  %s2968_s9 = sld [smem:[#allocation18_spill]] }
 0x527   : > { %p22_p6 = scmp.ge.s32.totalorder %s25_s11, 6   ;;  %s2969_s10 = sld [smem:[#allocation21_spill]] }
 0x528   : > { %s2970_s30 = sld [smem:[#allocation19_spill]]  ;;  %s2973_s24 = smov %s2230_s25 }
 0x529   : > { %s2971_s8 = sld [smem:[#allocation20_spill]]  ;;  %s2974_s25 = smov %s2234_s26 }
 0x52a   : > { %s2972_s12 = sld [smem:[#allocation22_spill]]  ;;  %s2975_s26 = smov %s2492_s29 }
 0x52b   : > { %s2976_s27 = smov %s2242_s28 }
 0x52c   : > { %s2977_s28 = smov %s2968_s9  ;;  %s2979_s9 = smov %s2982_s23 }
 0x52d   : > { %s2978_s29 = smov %s2969_s10  ;;  %24 = sbr.rel (!%p22_p6) target bundleno = 18 (0x12), region = 120 }
 0x530   : > { %s2980_s10 = smov %s2972_s12 }
 0x532   :  { %1609 = vsyncpa [#allocation5], 1 }
 0x533   :  { %1611 = vsyncpa [#allocation5 + $0x1], 1 }
 0x534   :  { %1612 = vsyncpa [#allocation8], 1 }
 0x535   :  { %1614 = vsyncpa [#allocation8 + $0x1], 1 }
 0x536   :  { %1615 = vsyncpa [#allocation11], 1 }
 0x537   :  { %1616 = vsyncpa [#allocation6], 1 }
 0x538   :  { %1618 = vsyncpa [#allocation6 + $0x1], 1 }

</bundles_post_ra>
